<compile_context>
chip_gen: v5e
topology: v5e:2x2
jax: 0.10.0
libtpu: 0.0.40
codegen_flags: <defaults>
</compile_context>

<pallas_src>
import jax
import jax.numpy as jnp
from jax.experimental import pallas as pl
from jax.experimental.pallas import tpu as pltpu

IN_DIM = 1000
HIDDEN_DIMS = (512, 256, 128)
OUT_DIM = 10

OUT_PAD = 128      # 10 -> 128: lane-dense output block (no masked stores)
TM_MAX = 1024      # max batch rows per grid step


def _round_up(n, m):
    return ((n + m - 1) // m) * m


def mlp_kernel(x_ref, w1, b1, w2, b2, w3, b3, w4, b4, o_ref):
    """One batch tile of the MLP. bf16 MXU inputs, f32 accumulation/activation."""
    h = x_ref[...].astype(jnp.bfloat16)                               # (tm, 1000) f32 -> bf16 (VPU)
    h = jnp.dot(h, w1[...], preferred_element_type=jnp.float32) + b1[...]
    h = jnp.maximum(h, 0.0).astype(jnp.bfloat16)                      # ReLU in f32, feed MXU bf16
    h = jnp.dot(h, w2[...], preferred_element_type=jnp.float32) + b2[...]
    h = jnp.maximum(h, 0.0).astype(jnp.bfloat16)
    h = jnp.dot(h, w3[...], preferred_element_type=jnp.float32) + b3[...]
    h = jnp.maximum(h, 0.0).astype(jnp.bfloat16)
    out = jnp.dot(h, w4[...], preferred_element_type=jnp.float32) + b4[...]
    o_ref[...] = out.astype(o_ref.dtype)                              # (tm, 128) bf16 lane-dense store


def init_params(key, in_dim=IN_DIM, hidden_dims=HIDDEN_DIMS, out_dim=OUT_DIM):
    """PyTorch nn.Linear-style init: U(-1/sqrt(fan_in), 1/sqrt(fan_in)), f32.

    Weights stored (fan_in, fan_out) (= torch W.T) so the kernel computes
    x @ W + b without a transpose.
    """
    dims = (in_dim,) + tuple(hidden_dims) + (out_dim,)
    params = []
    for i in range(len(dims) - 1):
        fan_in, fan_out = dims[i], dims[i + 1]
        key, kw, kb = jax.random.split(key, 3)
        bound = 1.0 / float(fan_in) ** 0.5
        w = jax.random.uniform(kw, (fan_in, fan_out), jnp.float32,
                               minval=-bound, maxval=bound)
        b = jax.random.uniform(kb, (1, fan_out), jnp.float32,
                               minval=-bound, maxval=bound)
        params.append((w, b))
    return params


def prepare_params(params):
    """Pad + cast once (amortized across calls): weights -> bf16, biases f32.

    Only the last layer is padded (10 -> 128 output columns) for a lane-dense
    output block; w1 stays at K=1000 (Mosaic pads the contraction internally).
    """
    (w1, b1), (w2, b2), (w3, b3), (w4, b4) = params
    w4p = jnp.zeros((w4.shape[0], OUT_PAD), jnp.float32).at[:, :w4.shape[1]].set(w4)
    b4p = jnp.zeros((1, OUT_PAD), jnp.float32).at[:, :b4.shape[1]].set(b4)
    return (
        w1.astype(jnp.bfloat16), b1,
        w2.astype(jnp.bfloat16), b2,
        w3.astype(jnp.bfloat16), b3,
        w4p.astype(jnp.bfloat16), b4p,
    )


@jax.jit
def mlp_forward(x, kernel_params):
    batch = x.shape[0]

    # --- tile-size choice (all static shape arithmetic under jit) -----------
    # As big as possible (grid-step overhead ~0.35 us dominates small tiles),
    # but keep >=2 tiles when the batch is large enough so the "parallel"
    # batch axis can be split across v7x's two TensorCores.
    batch8 = _round_up(batch, 8)
    tm = min(TM_MAX, batch8)
    if tm == batch8 and batch8 >= 2 * 512 and (batch8 // 2) % 8 == 0:
        tm = batch8 // 2
    batch_pad = _round_up(batch8, tm)
    grid = batch_pad // tm

    # Pad batch rows only when needed (common case: no extra HBM round trip).
    if batch_pad != batch:
        x = jnp.pad(x, ((0, batch_pad - batch), (0, 0)))

    w1, b1, w2, b2, w3, b3, w4, b4 = kernel_params
    flat = (w1, b1, w2, b2, w3, b3, w4, b4)

    flops = 2 * batch_pad * (IN_DIM * 512 + 512 * 256 + 256 * 128 + 128 * OUT_PAD)
    bytes_accessed = (
        sum(a.size * a.dtype.itemsize for a in flat)
        + batch_pad * IN_DIM * 4          # f32 x read
        + batch_pad * OUT_PAD * 2         # bf16 out write
    )

    out = pl.pallas_call(
        mlp_kernel,
        out_shape=jax.ShapeDtypeStruct((batch_pad, OUT_PAD), jnp.bfloat16),
        grid=(grid,),
        in_specs=[
            # streamed f32 input: (tm, 1000) block — 1000 equals the full last
            # dim, so the (8,128) divisibility rule does not apply to it.
            pl.BlockSpec((tm, IN_DIM), lambda i: (i, 0)),
        ] + [
            # weights/biases: full-extent blocks with a constant index_map ->
            # DMA'd once, VMEM-resident across every batch tile.
            pl.BlockSpec(a.shape, lambda i: (0, 0)) for a in flat
        ],
        out_specs=pl.BlockSpec((tm, OUT_PAD), lambda i: (i, 0)),
        compiler_params=pltpu.CompilerParams(
            dimension_semantics=("parallel",),      # v7x: batch tiles across 2 TCs
            vmem_limit_bytes=48 * 1024 * 1024,      # TM=1024 needs ~18 MiB > v5e's 16 MiB default
        ),
        cost_estimate=pl.CostEstimate(
            flops=flops, transcendentals=0, bytes_accessed=bytes_accessed),
    )(x, *flat)

    # Undo padding: (batch_pad, 128) bf16 -> (batch, 10) f32 (tiny copy).
    return out[:batch, :OUT_DIM].astype(jnp.float32)


def mlp_reference(x, params):
    """Pure-JAX f32 reference for correctness check."""
    h = x
    for i, (w, b) in enumerate(params):
        h = h @ w + b
        if i < len(params) - 1:
            h = jnp.maximum(h, 0.0)
    return h


if __name__ == "__main__":
    key = jax.random.PRNGKey(0)
    key, kx = jax.random.split(key)

    batch = 8
    x = jax.random.normal(kx, (batch, IN_DIM), jnp.float32)
    params = init_params(key)                 # f32 master params (torch-style init)
    kernel_params = prepare_params(params)    # bf16 weights / f32 biases, last layer padded

    out = mlp_forward(x, kernel_params)
    out = jax.block_until_ready(out)

    ref = mlp_reference(x, params)
    assert out.shape == (batch, OUT_DIM), out.shape
    # Intentional precision trade-off: bf16 weights/activations/output vs f32
    # reference -> loosened tolerance.
    max_err = float(jnp.max(jnp.abs(out - ref)))
    assert jnp.allclose(out, ref, atol=5e-2, rtol=5e-2), f"mismatch, max_err={max_err}"

    print("KERNEL_OK")
</pallas_src>

<mosaic_0001>
module attributes {stable_mosaic.version = 11 : i64} {
  func.func @mlp_kernel(%arg0: i32, %arg1: memref<8x1000xf32, #tpu.memory_space<vmem>>, %arg2: memref<1000x512xbf16, #tpu.memory_space<vmem>>, %arg3: memref<1x512xf32, #tpu.memory_space<vmem>>, %arg4: memref<512x256xbf16, #tpu.memory_space<vmem>>, %arg5: memref<1x256xf32, #tpu.memory_space<vmem>>, %arg6: memref<256x128xbf16, #tpu.memory_space<vmem>>, %arg7: memref<1x128xf32, #tpu.memory_space<vmem>>, %arg8: memref<128x128xbf16, #tpu.memory_space<vmem>>, %arg9: memref<1x128xf32, #tpu.memory_space<vmem>>, %arg10: memref<8x128xbf16, #tpu.memory_space<vmem>>) attributes {dimension_semantics = [#tpu.dimension_semantics<parallel>], iteration_bounds = array<i64: 1>, scalar_prefetch = 0 : i64, scratch_operands = 0 : i64, tpu.core_type = #tpu.core_type<tc>, window_params = [{transform_indices = @transform_0, window_bounds = array<i64: 8, 1000>}, {pipeline_mode = #tpu.pipeline_mode<synchronous>, transform_indices = @transform_1, window_bounds = array<i64: 1000, 512>}, {pipeline_mode = #tpu.pipeline_mode<synchronous>, transform_indices = @transform_2, window_bounds = array<i64: 1, 512>}, {pipeline_mode = #tpu.pipeline_mode<synchronous>, transform_indices = @transform_3, window_bounds = array<i64: 512, 256>}, {pipeline_mode = #tpu.pipeline_mode<synchronous>, transform_indices = @transform_4, window_bounds = array<i64: 1, 256>}, {pipeline_mode = #tpu.pipeline_mode<synchronous>, transform_indices = @transform_5, window_bounds = array<i64: 256, 128>}, {pipeline_mode = #tpu.pipeline_mode<synchronous>, transform_indices = @transform_6, window_bounds = array<i64: 1, 128>}, {pipeline_mode = #tpu.pipeline_mode<synchronous>, transform_indices = @transform_7, window_bounds = array<i64: 128, 128>}, {pipeline_mode = #tpu.pipeline_mode<synchronous>, transform_indices = @transform_8, window_bounds = array<i64: 1, 128>}, {transform_indices = @transform_9, window_bounds = array<i64: 8, 128>}]} {
    %c0 = arith.constant 0 : index
    %c0_0 = arith.constant 0 : index
    %0 = vector.load %arg1[%c0, %c0_0] : memref<8x1000xf32, #tpu.memory_space<vmem>>, vector<8x1000xf32>
    %1 = arith.truncf %0 : vector<8x1000xf32> to vector<8x1000xbf16>
    %c0_1 = arith.constant 0 : index
    %c0_2 = arith.constant 0 : index
    %2 = vector.load %arg2[%c0_1, %c0_2] : memref<1000x512xbf16, #tpu.memory_space<vmem>>, vector<1000x512xbf16>
    %cst = arith.constant dense<0.000000e+00> : vector<8x512xf32>
    %3 = tpu.matmul %1, %2, %cst {dimension_numbers = #tpu.dot_dimension_numbers<[1], [0], [0], [1], [0, 0, 1, 1], [], []>} : vector<8x1000xbf16>, vector<1000x512xbf16>, vector<8x512xf32> -> vector<8x512xf32>
    %c0_3 = arith.constant 0 : index
    %c0_4 = arith.constant 0 : index
    %4 = vector.load %arg3[%c0_3, %c0_4] : memref<1x512xf32, #tpu.memory_space<vmem>>, vector<1x512xf32>
    %5 = vector.broadcast %4 : vector<1x512xf32> to vector<8x512xf32>
    %6 = arith.addf %3, %5 : vector<8x512xf32>
    %cst_5 = arith.constant 0.000000e+00 : f32
    %7 = vector.broadcast %cst_5 : f32 to vector<8x512xf32>
    %8 = arith.maximumf %6, %7 : vector<8x512xf32>
    %9 = arith.truncf %8 : vector<8x512xf32> to vector<8x512xbf16>
    %c0_6 = arith.constant 0 : index
    %c0_7 = arith.constant 0 : index
    %10 = vector.load %arg4[%c0_6, %c0_7] : memref<512x256xbf16, #tpu.memory_space<vmem>>, vector<512x256xbf16>
    %cst_8 = arith.constant dense<0.000000e+00> : vector<8x256xf32>
    %11 = tpu.matmul %9, %10, %cst_8 {dimension_numbers = #tpu.dot_dimension_numbers<[1], [0], [0], [1], [0, 0, 1, 1], [], []>} : vector<8x512xbf16>, vector<512x256xbf16>, vector<8x256xf32> -> vector<8x256xf32>
    %c0_9 = arith.constant 0 : index
    %c0_10 = arith.constant 0 : index
    %12 = vector.load %arg5[%c0_9, %c0_10] : memref<1x256xf32, #tpu.memory_space<vmem>>, vector<1x256xf32>
    %13 = vector.broadcast %12 : vector<1x256xf32> to vector<8x256xf32>
    %14 = arith.addf %11, %13 : vector<8x256xf32>
    %cst_11 = arith.constant 0.000000e+00 : f32
    %15 = vector.broadcast %cst_11 : f32 to vector<8x256xf32>
    %16 = arith.maximumf %14, %15 : vector<8x256xf32>
    %17 = arith.truncf %16 : vector<8x256xf32> to vector<8x256xbf16>
    %c0_12 = arith.constant 0 : index
    %c0_13 = arith.constant 0 : index
    %18 = vector.load %arg6[%c0_12, %c0_13] : memref<256x128xbf16, #tpu.memory_space<vmem>>, vector<256x128xbf16>
    %cst_14 = arith.constant dense<0.000000e+00> : vector<8x128xf32>
    %19 = tpu.matmul %17, %18, %cst_14 {dimension_numbers = #tpu.dot_dimension_numbers<[1], [0], [0], [1], [0, 0, 1, 1], [], []>} : vector<8x256xbf16>, vector<256x128xbf16>, vector<8x128xf32> -> vector<8x128xf32>
    %c0_15 = arith.constant 0 : index
    %c0_16 = arith.constant 0 : index
    %20 = vector.load %arg7[%c0_15, %c0_16] : memref<1x128xf32, #tpu.memory_space<vmem>>, vector<1x128xf32>
    %21 = vector.broadcast %20 : vector<1x128xf32> to vector<8x128xf32>
    %22 = arith.addf %19, %21 : vector<8x128xf32>
    %cst_17 = arith.constant 0.000000e+00 : f32
    %23 = vector.broadcast %cst_17 : f32 to vector<8x128xf32>
    %24 = arith.maximumf %22, %23 : vector<8x128xf32>
    %25 = arith.truncf %24 : vector<8x128xf32> to vector<8x128xbf16>
    %c0_18 = arith.constant 0 : index
    %c0_19 = arith.constant 0 : index
    %26 = vector.load %arg8[%c0_18, %c0_19] : memref<128x128xbf16, #tpu.memory_space<vmem>>, vector<128x128xbf16>
    %cst_20 = arith.constant dense<0.000000e+00> : vector<8x128xf32>
    %27 = tpu.matmul %25, %26, %cst_20 {dimension_numbers = #tpu.dot_dimension_numbers<[1], [0], [0], [1], [0, 0, 1, 1], [], []>} : vector<8x128xbf16>, vector<128x128xbf16>, vector<8x128xf32> -> vector<8x128xf32>
    %c0_21 = arith.constant 0 : index
    %c0_22 = arith.constant 0 : index
    %28 = vector.load %arg9[%c0_21, %c0_22] : memref<1x128xf32, #tpu.memory_space<vmem>>, vector<1x128xf32>
    %29 = vector.broadcast %28 : vector<1x128xf32> to vector<8x128xf32>
    %30 = arith.addf %27, %29 : vector<8x128xf32>
    %31 = arith.truncf %30 : vector<8x128xf32> to vector<8x128xbf16>
    %c0_23 = arith.constant 0 : index
    %c0_24 = arith.constant 0 : index
    %32 = vector.load %arg10[%c0_23, %c0_24] : memref<8x128xbf16, #tpu.memory_space<vmem>>, vector<8x128xbf16>
    tpu.vector_store %arg10[%c0_23, %c0_24], %31 {strides = array<i32>} : memref<8x128xbf16, #tpu.memory_space<vmem>>, vector<8x128xbf16>,
    return
  }
  func.func @transform_0(%arg0: i32) -> (i32, i32) {
    %c0_i32 = arith.constant 0 : i32
    %c0_i32_0 = arith.constant 0 : i32
    return %arg0, %c0_i32 : i32, i32
  }
  func.func @transform_1(%arg0: i32) -> (i32, i32) {
    %c0_i32 = arith.constant 0 : i32
    %c0_i32_0 = arith.constant 0 : i32
    %c0_i32_1 = arith.constant 0 : i32
    return %c0_i32, %c0_i32_0 : i32, i32
  }
  func.func @transform_2(%arg0: i32) -> (i32, i32) {
    %c0_i32 = arith.constant 0 : i32
    %c0_i32_0 = arith.constant 0 : i32
    %c0_i32_1 = arith.constant 0 : i32
    return %c0_i32, %c0_i32_0 : i32, i32
  }
  func.func @transform_3(%arg0: i32) -> (i32, i32) {
    %c0_i32 = arith.constant 0 : i32
    %c0_i32_0 = arith.constant 0 : i32
    %c0_i32_1 = arith.constant 0 : i32
    return %c0_i32, %c0_i32_0 : i32, i32
  }
  func.func @transform_4(%arg0: i32) -> (i32, i32) {
    %c0_i32 = arith.constant 0 : i32
    %c0_i32_0 = arith.constant 0 : i32
    %c0_i32_1 = arith.constant 0 : i32
    return %c0_i32, %c0_i32_0 : i32, i32
  }
  func.func @transform_5(%arg0: i32) -> (i32, i32) {
    %c0_i32 = arith.constant 0 : i32
    %c0_i32_0 = arith.constant 0 : i32
    %c0_i32_1 = arith.constant 0 : i32
    return %c0_i32, %c0_i32_0 : i32, i32
  }
  func.func @transform_6(%arg0: i32) -> (i32, i32) {
    %c0_i32 = arith.constant 0 : i32
    %c0_i32_0 = arith.constant 0 : i32
    %c0_i32_1 = arith.constant 0 : i32
    return %c0_i32, %c0_i32_0 : i32, i32
  }
  func.func @transform_7(%arg0: i32) -> (i32, i32) {
    %c0_i32 = arith.constant 0 : i32
    %c0_i32_0 = arith.constant 0 : i32
    %c0_i32_1 = arith.constant 0 : i32
    return %c0_i32, %c0_i32_0 : i32, i32
  }
  func.func @transform_8(%arg0: i32) -> (i32, i32) {
    %c0_i32 = arith.constant 0 : i32
    %c0_i32_0 = arith.constant 0 : i32
    %c0_i32_1 = arith.constant 0 : i32
    return %c0_i32, %c0_i32_0 : i32, i32
  }
  func.func @transform_9(%arg0: i32) -> (i32, i32) {
    %c0_i32 = arith.constant 0 : i32
    %c0_i32_0 = arith.constant 0 : i32
    return %arg0, %c0_i32 : i32, i32
  }
}

</mosaic_0001>

<bundles_post_ra>
// kernel: mlp_forward.1
= control target key start
LH: loop header
LB: loop body
LE: loop exit
PB: predicated region body
PF: predicated region fallthrough
CT: control target
= control target key end

     0   :  { %14 = vsyncpa [#allocation3], 0  ;;  %s4895_s0 = inlined_call_operand.hbm [shape: f32[8,1000], index: 0, kind: input, shape index: {}]   ;;  %s4896_s1 = inlined_call_operand.hbm [shape: bf16[1000,512], index: 1, kind: input, shape index: {}]   ;;  %s4897_s2 = inlined_call_operand.hbm [shape: f32[1,512], index: 2, kind: input, shape index: {}]   ;;  %s4898_s3 = inlined_call_operand.hbm [shape: bf16[512,256], index: 3, kind: input, shape index: {}]   ;;  %s4899_s4 = inlined_call_operand.vmem [shape: f32[1,256], index: 4, kind: input, shape index: {}]   ;;  %s4900_s5 = inlined_call_operand.hbm [shape: bf16[256,128], index: 5, kind: input, shape index: {}]   ;;  %s4901_s6 = inlined_call_operand.vmem [shape: f32[1,128], index: 6, kind: input, shape index: {}]   ;;  %s4902_s7 = inlined_call_operand.hbm [shape: bf16[128,128], index: 7, kind: input, shape index: {}]   ;;  %s4903_s8 = inlined_call_operand.vmem [shape: f32[1,128], index: 8, kind: input, shape index: {}]   ;;  %s4904_s9 = inlined_call_operand.vmem [shape: bf16[8,128], index: 9, kind: output, shape index: {}]  }
   0x1   :  { %15 = vsyncpa [#allocation5], 0 }
   0x2   :  { %16 = vsyncpa [#allocation8], 0  ;;  %s33_s11 = sshll.u32 %s4896_s1, 4  ;;  %s34_s11 = int_to_ptr.hbm [resolvable:$true] %s33_s11 }
   0x3   :  { %17 = vsyncpa [#allocation11], 0  ;;  %s4689_s12 = smov [#allocation4]   ;;  %s57_s16 = sshll.u32 %s4898_s3, 4  ;;  %s58_s16 = int_to_ptr.hbm [resolvable:$true] %s57_s16 }
   0x4   :  { %s35_s13 = sshll.u32 %s4689_s12, 4  ;;  %s4690_s17 = smov 256   ;;  %s36_s13 = int_to_ptr.vmem [resolvable:$true] %s35_s13 }
   0x5   :  { %s4691_s18 = smov 16   ;;  %s4692_s19 = smov [#allocation7]  }
   0x6   :  { %41 = dma.hbm_to_vmem [thread:$0]  %s34_s11, 32000, %s36_s13, [#allocation5], %s4690_s17, %s4690_s17, %s4691_s18  }
   0x7   :  { %s59_s20 = sshll.u32 %s4692_s19, 4  ;;  %s4693_s21 = smov 128   ;;  %s60_s20 = int_to_ptr.vmem [resolvable:$true] %s59_s20 }
   0x8   :  { %s4694_s22 = smov 8   ;;  %s23_s24 = sshll.u32 %s4895_s0, 4  ;;  %s24_s24 = int_to_ptr.hbm [resolvable:$true] %s23_s24 }
   0x9   :  { %65 = dma.hbm_to_vmem [thread:$0]  %s58_s16, 8192, %s60_s20, [#allocation8], %s4693_s21, %s4693_s21, %s4694_s22  }
   0xa   :  { %s4695_s25 = smov [#allocation2]   ;;  %s47_s28 = sshll.u32 %s4897_s2, 4  ;;  %s48_s28 = int_to_ptr.hbm [resolvable:$true] %s47_s28 }
   0xb   :  { %s25_s26 = sshll.u32 %s4695_s25, 4  ;;  %s4696_s29 = smov [#allocation6]   ;;  %s26_s26 = int_to_ptr.vmem [resolvable:$true] %s25_s26 }
   0xc   :  { %28 = dma.hbm_to_vmem [thread:$0]  %s24_s24, 1024, %s26_s26, [#allocation3]  }
   0xd   :  { %s49_s30 = sshll.u32 %s4696_s29, 4  ;;  %s72_s12 = sshll.u32 %s4900_s5, 4  ;;  %s50_s30 = int_to_ptr.vmem [resolvable:$true] %s49_s30  ;;  %s73_s12 = int_to_ptr.hbm [resolvable:$true] %s72_s12 }
   0xe   :  { %52 = dma.hbm_to_vmem [thread:$0]  %s48_s28, 64, %s50_s30, [#allocation5]  }
   0xf   :  { %s4697_s0 = smov [#allocation9]   ;;  %s87_s16 = sshll.u32 %s4902_s7, 4  ;;  %s88_s16 = int_to_ptr.hbm [resolvable:$true] %s87_s16 }
  0x10   :  { %s74_s13 = sshll.u32 %s4697_s0, 4  ;;  %s4698_s17 = smov 64   ;;  %s75_s13 = int_to_ptr.vmem [resolvable:$true] %s74_s13 }
  0x11   :  { %s4699_s2 = smov 4   ;;  %s4700_s18 = smov [#allocation10]  }
  0x12   :  { %80 = dma.hbm_to_vmem [thread:$0]  %s73_s12, 2048, %s75_s13, [#allocation8], %s4698_s17, %s4698_s17, %s4699_s2  }
  0x13   :  { %s89_s19 = sshll.u32 %s4700_s18, 4  ;;  %s90_s19 = int_to_ptr.vmem [resolvable:$true] %s89_s19 }
  0x14   :  { %95 = dma.hbm_to_vmem [thread:$0]  %s88_s16, 1024, %s90_s19, [#allocation11], %s4698_s17, %s4698_s17, %s4699_s2  }
  0x15   :  { %4681 = dma.done.wait [#allocation3], 1024  }
  0x16   :  { %4682 = vsyncadd [#allocation3], 4294966272 }
  0x17   :  { %4683 = dma.done.wait [#allocation5], 32064  }
  0x18   :  { %4684 = vsyncadd [#allocation5], 4294935232 }
  0x19   :  { %4685 = dma.done.wait [#allocation8], 10240  }
  0x1a   :  { %4686 = vsyncadd [#allocation8], 4294957056 }
  0x1b   :  { %4687 = dma.done.wait [#allocation11], 1024  }
  0x1c   :  { %4688 = vsyncadd [#allocation11], 4294966272  ;;  %v2953_v0 = vld [vmem:[#allocation4 + $0xe0] sm:$0xf]  ;;  %v4217_v1 = vld [vmem:[#allocation4 + $0xec] sm:$0xf0] }
  0x1d   :  { %v3081_v2 = vld [vmem:[#allocation4 + $0x1e0] sm:$0xf]  ;;  %v2954_v3 = vor.u32 %v4217_v1, %v2953_v0  ;;  %v4249_v4 = vld [vmem:[#allocation4 + $0x1ec] sm:$0xf0]  ;;  %vm1653_vm0 = vcmask 1043456   ;;  %vm1649_vm1 = vcmask 850944  }
  0x1e   :  { %v3209_v5 = vld [vmem:[#allocation4 + $0x2e0] sm:$0xf]  ;;  %v4281_v6 = vld [vmem:[#allocation4 + $0x2ec] sm:$0xf0]  ;;  %v3082_v7 = vor.u32 %v4249_v4, %v3081_v2 }
  0x1f   :  { %v3210_v8 = vor.u32 %v4281_v6, %v3209_v5  ;;  %v3337_v9 = vld [vmem:[#allocation4 + $0x3e0] sm:$0xf]  ;;  %v4313_v10 = vld [vmem:[#allocation4 + $0x3ec] sm:$0xf0]  ;;  %1666 = vmatpush.bf16.msra.mxu0 %v2954_v3 }
  0x20   :  { %v2937_v11 = vld [vmem:[#allocation4 + $0xc0] sm:$0xf]  ;;  %v3338_v12 = vor.u32 %v4313_v10, %v3337_v9  ;;  %v4213_v13 = vld [vmem:[#allocation4 + $0xcc] sm:$0xf0]  ;;  %1679 = vmatpush.bf16.msra.mxu1 %v3082_v7 }
  0x21   :  { %v3065_v14 = vld [vmem:[#allocation4 + $0x1c0] sm:$0xf]  ;;  %v4245_v15 = vld [vmem:[#allocation4 + $0x1cc] sm:$0xf0]  ;;  %1692 = vmatpush.bf16.msra.mxu2 %v3210_v8  ;;  %v2938_v16 = vor.u32 %v4213_v13, %v2937_v11 }
  0x22   :  { %v3066_v17 = vor.u32 %v4245_v15, %v3065_v14  ;;  %v3193_v18 = vld [vmem:[#allocation4 + $0x2c0] sm:$0xf]  ;;  %v4277_v19 = vld [vmem:[#allocation4 + $0x2cc] sm:$0xf0]  ;;  %1705 = vmatpush.bf16.msra.mxu3 %v3338_v12 }
  0x23   :  { %v3321_v20 = vld [vmem:[#allocation4 + $0x3c0] sm:$0xf]  ;;  %v3194_v21 = vor.u32 %v4277_v19, %v3193_v18  ;;  %v4309_v22 = vld [vmem:[#allocation4 + $0x3cc] sm:$0xf0]  ;;  %1667 = vmatpush.bf16.msra.mxu0 %v2938_v16 }
  0x24   :  { %v2921_v23 = vld [vmem:[#allocation4 + $0xa0] sm:$0xf]  ;;  %v4209_v24 = vld [vmem:[#allocation4 + $0xac] sm:$0xf0]  ;;  %v3322_v25 = vor.u32 %v4309_v22, %v3321_v20  ;;  %1680 = vmatpush.bf16.msra.mxu1 %v3066_v17 }
  0x25   :  { %v3049_v26 = vld [vmem:[#allocation4 + $0x1a0] sm:$0xf]  ;;  %v4241_v27 = vld [vmem:[#allocation4 + $0x1ac] sm:$0xf0]  ;;  %v2922_v29 = vor.u32 %v4209_v24, %v2921_v23  ;;  %1693 = vmatpush.bf16.msra.mxu2 %v3194_v21 }
  0x26   :  { %v3177_v28 = vld [vmem:[#allocation4 + $0x2a0] sm:$0xf]  ;;  %v4273_v30 = vld [vmem:[#allocation4 + $0x2ac] sm:$0xf0]  ;;  %v3050_v33 = vor.u32 %v4241_v27, %v3049_v26  ;;  %1706 = vmatpush.bf16.msra.mxu3 %v3322_v25 }
  0x27   :  { %v3305_v31 = vld [vmem:[#allocation4 + $0x3a0] sm:$0xf]  ;;  %v4305_v32 = vld [vmem:[#allocation4 + $0x3ac] sm:$0xf0]  ;;  %v3178_v34 = vor.u32 %v4273_v30, %v3177_v28  ;;  %1668 = vmatpush.bf16.msra.mxu0 %v2922_v29 }
  0x28   :  { %v2905_v35 = vld [vmem:[#allocation4 + $0x80] sm:$0xf]  ;;  %v4205_v36 = vld [vmem:[#allocation4 + $0x8c] sm:$0xf0]  ;;  %v3306_v38 = vor.u32 %v4305_v32, %v3305_v31  ;;  %1681 = vmatpush.bf16.msra.mxu1 %v3050_v33 }
  0x29   :  { %v3033_v37 = vld [vmem:[#allocation4 + $0x180] sm:$0xf]  ;;  %v4237_v39 = vld [vmem:[#allocation4 + $0x18c] sm:$0xf0]  ;;  %v2906_v44 = vor.u32 %v4205_v36, %v2905_v35  ;;  %1694 = vmatpush.bf16.msra.mxu2 %v3178_v34 }
  0x2a   :  { %v3161_v40 = vld [vmem:[#allocation4 + $0x280] sm:$0xf]  ;;  %v4269_v41 = vld [vmem:[#allocation4 + $0x28c] sm:$0xf0]  ;;  %v3034_v45 = vor.u32 %v4237_v39, %v3033_v37  ;;  %1707 = vmatpush.bf16.msra.mxu3 %v3306_v38 }
  0x2b   :  { %v3289_v42 = vld [vmem:[#allocation4 + $0x380] sm:$0xf]  ;;  %v4301_v43 = vld [vmem:[#allocation4 + $0x38c] sm:$0xf0]  ;;  %v3162_v46 = vor.u32 %v4269_v41, %v3161_v40  ;;  %1669 = vmatpush.bf16.msra.mxu0 %v2906_v44 }
  0x2c   :  { %v2889_v47 = vld [vmem:[#allocation4 + $0x60] sm:$0xf]  ;;  %v4201_v48 = vld [vmem:[#allocation4 + $0x6c] sm:$0xf0]  ;;  %v3290_v50 = vor.u32 %v4301_v43, %v3289_v42  ;;  %1682 = vmatpush.bf16.msra.mxu1 %v3034_v45 }
  0x2d   :  { %v3017_v49 = vld [vmem:[#allocation4 + $0x160] sm:$0xf]  ;;  %v4233_v51 = vld [vmem:[#allocation4 + $0x16c] sm:$0xf0]  ;;  %v2890_v56 = vor.u32 %v4201_v48, %v2889_v47  ;;  %1695 = vmatpush.bf16.msra.mxu2 %v3162_v46 }
  0x2e   :  { %v3145_v52 = vld [vmem:[#allocation4 + $0x260] sm:$0xf]  ;;  %v4265_v53 = vld [vmem:[#allocation4 + $0x26c] sm:$0xf0]  ;;  %v3018_v57 = vor.u32 %v4233_v51, %v3017_v49  ;;  %1708 = vmatpush.bf16.msra.mxu3 %v3290_v50 }
  0x2f   :  { %v3273_v54 = vld [vmem:[#allocation4 + $0x360] sm:$0xf]  ;;  %v4297_v55 = vld [vmem:[#allocation4 + $0x36c] sm:$0xf0]  ;;  %v3146_v58 = vor.u32 %v4265_v53, %v3145_v52  ;;  %1670 = vmatpush.bf16.msra.mxu0 %v2890_v56 }
  0x30   :  { %v2873_v59 = vld [vmem:[#allocation4 + $0x40] sm:$0xf]  ;;  %v4197_v60 = vld [vmem:[#allocation4 + $0x4c] sm:$0xf0]  ;;  %v3274_v62 = vor.u32 %v4297_v55, %v3273_v54  ;;  %1683 = vmatpush.bf16.msra.mxu1 %v3018_v57 }
  0x31   :  { %v3001_v61 = vld [vmem:[#allocation4 + $0x140] sm:$0xf]  ;;  %v4229_v63 = vld [vmem:[#allocation4 + $0x14c] sm:$0xf0]  ;;  %v2874_v4 = vor.u32 %v4197_v60, %v2873_v59  ;;  %1696 = vmatpush.bf16.msra.mxu2 %v3146_v58 }
  0x32   :  { %v3129_v0 = vld [vmem:[#allocation4 + $0x240] sm:$0xf]  ;;  %v4261_v1 = vld [vmem:[#allocation4 + $0x24c] sm:$0xf0]  ;;  %v3002_v5 = vor.u32 %v4229_v63, %v3001_v61  ;;  %1709 = vmatpush.bf16.msra.mxu3 %v3274_v62 }
  0x33   :  { %v3257_v2 = vld [vmem:[#allocation4 + $0x340] sm:$0xf]  ;;  %v4293_v3 = vld [vmem:[#allocation4 + $0x34c] sm:$0xf0]  ;;  %v3130_v6 = vor.u32 %v4261_v1, %v3129_v0  ;;  %1671 = vmatpush.bf16.msra.mxu0 %v2874_v4  ;;  %v124_v4 = vld [vmem:[#allocation2 + $0x8] sm:$0xff] }
  0x34   :  { %v2857_v7 = vld [vmem:[#allocation4 + $0x20] sm:$0xf]  ;;  %v4193_v8 = vld [vmem:[#allocation4 + $0x2c] sm:$0xf0]  ;;  %v3258_v10 = vor.u32 %v4293_v3, %v3257_v2  ;;  %1684 = vmatpush.bf16.msra.mxu1 %v3002_v5  ;;  %v126_v3 = vld [vmem:[#allocation2 + $0x18] sm:$0xff] }
  0x35   :  { %v2985_v9 = vld [vmem:[#allocation4 + $0x120] sm:$0xf]  ;;  %v4225_v11 = vld [vmem:[#allocation4 + $0x12c] sm:$0xf0]  ;;  %v2858_v16 = vor.u32 %v4193_v8, %v2857_v7  ;;  %1697 = vmatpush.bf16.msra.mxu2 %v3130_v6  ;;  %v4778_v7 = vpack.c.bf16 %v126_v3, %v126_v3  ;;  %v4780_v8 = vpack.c.bf16 %v124_v4, %v124_v4 }
  0x36   :  { %v3113_v12 = vld [vmem:[#allocation4 + $0x220] sm:$0xf]  ;;  %v4257_v13 = vld [vmem:[#allocation4 + $0x22c] sm:$0xf0]  ;;  %v2986_v20 = vor.u32 %v4225_v11, %v2985_v9  ;;  %1710 = vmatpush.bf16.msra.mxu3 %v3258_v10 }
  0x37   :  { %v3241_v14 = vld [vmem:[#allocation4 + $0x320] sm:$0xf]  ;;  %v4289_v15 = vld [vmem:[#allocation4 + $0x32c] sm:$0xf0]  ;;  %v3114_v21 = vor.u32 %v4257_v13, %v3113_v12  ;;  %1672 = vmatpush.bf16.msra.mxu0 %v2858_v16 }
  0x38   :  { %v2841_v17 = vld [vmem:[#allocation4] sm:$0xf]  ;;  %v4189_v18 = vld [vmem:[#allocation4 + $0xc] sm:$0xf0]  ;;  %v3242_v26 = vor.u32 %v4289_v15, %v3241_v14  ;;  %1685 = vmatpush.bf16.msra.mxu1 %v2986_v20 }
  0x39   :  { %v4769_v19 = vld [vmem:[#allocation4 + $0x7c0] sm:$0xff]  ;;  %v4221_v23 = vld [vmem:[#allocation4 + $0x10c] sm:$0xf0]  ;;  %v2842_v33 = vor.u32 %v4189_v18, %v2841_v17  ;;  %1698 = vmatpush.bf16.msra.mxu2 %v3114_v21 }
  0x3a   :  { %v2969_v22 = vld [vmem:[#allocation4 + $0x100] sm:$0xf]  ;;  %v1145_v25 = vunpack.c.l.b16 %v4769_v19  ;;  %v4253_v27 = vld [vmem:[#allocation4 + $0x20c] sm:$0xf0]  ;;  %1711 = vmatpush.bf16.msra.mxu3 %v3242_v26 }
  0x3b   :  { %v3097_v24 = vld [vmem:[#allocation4 + $0x200] sm:$0xf]  ;;  %v4285_v29 = vld [vmem:[#allocation4 + $0x30c] sm:$0xf0]  ;;  %v2970_v37 = vor.u32 %v4221_v23, %v2969_v22  ;;  %1673 = vmatpush.bf16.msra.mxu0 %v2842_v33 }
  0x3c   :  { %v3225_v28 = vld [vmem:[#allocation4 + $0x300] sm:$0xf]  ;;  %v4345_v31 = vld [vmem:[#allocation4 + $0x4ec] sm:$0xf0]  ;;  %v3098_v38 = vor.u32 %v4253_v27, %v3097_v24  ;;  %v1397_v39 = vpack.c.b16 %v1145_v25, %v1145_v25 }
  0x3d   :  { %v3465_v30 = vld [vmem:[#allocation4 + $0x4e0] sm:$0xf]  ;;  %v4377_v34 = vld [vmem:[#allocation4 + $0x5ec] sm:$0xf0]  ;;  %v3226_v41 = vor.u32 %v4285_v29, %v3225_v28  ;;  %1686 = vmatpush.bf16.msra.mxu1 %v2970_v37 }
  0x3e   :  { %v3593_v32 = vld [vmem:[#allocation4 + $0x5e0] sm:$0xf]  ;;  %v4409_v36 = vld [vmem:[#allocation4 + $0x6ec] sm:$0xf0]  ;;  %v3466_v42 = vor.u32 %v4345_v31, %v3465_v30  ;;  %1699 = vmatpush.bf16.msra.mxu2 %v3098_v38  ;;  %v1655_v52 = vsel %vm1653_vm0, %v1397_v39, 0 }
  0x3f   :  { %v3721_v35 = vld [vmem:[#allocation4 + $0x6e0] sm:$0xf]  ;;  %v125_v40 = vld [vmem:[#allocation2 + $0x10] sm:$0xff]  ;;  %v3594_v43 = vor.u32 %v4377_v34, %v3593_v32  ;;  %1712 = vmatpush.bf16.msra.mxu3 %v3226_v41 }
  0x40   :  { %v3722_v44 = vor.u32 %v4409_v36, %v3721_v35  ;;  %v3449_v45 = vld [vmem:[#allocation4 + $0x4c0] sm:$0xf]  ;;  %v4341_v46 = vld [vmem:[#allocation4 + $0x4cc] sm:$0xf0]  ;;  %v4772_v51 = vpack.c.bf16 %v125_v40, %v125_v40  ;;  %1718 = vmatpush.bf16.msrb.mxu0 %v3466_v42  ;;  %1687 = vmatmul.bf16.vlgmr.msra.gmra.mxu1 %v4780_v8 }
  0x41   :  { %v3577_v47 = vld [vmem:[#allocation4 + $0x5c0] sm:$0xf]  ;;  %v4373_v48 = vld [vmem:[#allocation4 + $0x5cc] sm:$0xf0]  ;;  %v3450_v55 = vor.u32 %v4341_v46, %v3449_v45  ;;  %1731 = vmatpush.bf16.msrb.mxu1 %v3594_v43 }
  0x42   :  { %v3705_v49 = vld [vmem:[#allocation4 + $0x6c0] sm:$0xf]  ;;  %v4405_v50 = vld [vmem:[#allocation4 + $0x6cc] sm:$0xf0]  ;;  %1744 = vmatpush.bf16.msrb.mxu2 %v3722_v44  ;;  %v3578_v59 = vor.u32 %v4373_v48, %v3577_v47  ;;  %1713 = vmatmul.bf16.vlgmr.msra.gmra.mxu3 %v4778_v7 }
  0x43   :  { %v3817_v53 = vld [vmem:[#allocation4 + $0x7a0] sm:$0xf]  ;;  %v4433_v54 = vld [vmem:[#allocation4 + $0x7ac] sm:$0xf0]  ;;  %v3706_v60 = vor.u32 %v4405_v50, %v3705_v49  ;;  %1758 = vmatpush.bf16.msrb.mxu3 %v1655_v52  ;;  %1700 = vmatmul.bf16.vlgmr.msra.gmra.mxu2 %v4772_v51 }
  0x44   :  { %v3433_v56 = vld [vmem:[#allocation4 + $0x4a0] sm:$0xf]  ;;  %v4337_v57 = vld [vmem:[#allocation4 + $0x4ac] sm:$0xf0]  ;;  %v3818_v0 = vor.u32 %v4433_v54, %v3817_v53  ;;  %1719 = vmatpush.bf16.msrb.mxu0 %v3450_v55 }
  0x45   :  { %v3561_v58 = vld [vmem:[#allocation4 + $0x5a0] sm:$0xf]  ;;  %v4369_v61 = vld [vmem:[#allocation4 + $0x5ac] sm:$0xf0]  ;;  %v3434_v9 = vor.u32 %v4337_v57, %v3433_v56  ;;  %1732 = vmatpush.bf16.msrb.mxu1 %v3578_v59  ;;  %v4215_v59 = vld [vmem:[#allocation4 + $0xe4] sm:$0xf] }
  0x46   :  { %v3689_v62 = vld [vmem:[#allocation4 + $0x6a0] sm:$0xf]  ;;  %v4401_v1 = vld [vmem:[#allocation4 + $0x6ac] sm:$0xf0]  ;;  %1745 = vmatpush.bf16.msrb.mxu2 %v3706_v60  ;;  %v3562_v10 = vor.u32 %v4369_v61, %v3561_v58  ;;  %v2955_v61 = vld [vmem:[#allocation4 + $0xf0] sm:$0xf0] }
  0x47   :  { %v123_v63 = vld [vmem:[#allocation2] sm:$0xff]  ;;  %v4429_v6 = vld [vmem:[#allocation4 + $0x78c] sm:$0xf0]  ;;  %v3690_v11 = vor.u32 %v4401_v1, %v3689_v62  ;;  %1759 = vmatpush.bf16.msrb.mxu3 %v3818_v0 }
  0x48   :  { %v4776_v2 = vpack.c.bf16 %v123_v63, %v123_v63  ;;  %v3801_v5 = vld [vmem:[#allocation4 + $0x780] sm:$0xf]  ;;  %v4333_v13 = vld [vmem:[#allocation4 + $0x48c] sm:$0xf0]  ;;  %1720 = vmatpush.bf16.msrb.mxu0 %v3434_v9 }
  0x49   :  { %v3417_v12 = vld [vmem:[#allocation4 + $0x480] sm:$0xf]  ;;  %v3802_v15 = vor.u32 %v4429_v6, %v3801_v5  ;;  %v4365_v16 = vld [vmem:[#allocation4 + $0x58c] sm:$0xf0]  ;;  %1733 = vmatpush.bf16.msrb.mxu1 %v3562_v10  ;;  %v4211_v10 = vld [vmem:[#allocation4 + $0xc4] sm:$0xf] }
  0x4a   :  { %v3545_v14 = vld [vmem:[#allocation4 + $0x580] sm:$0xf]  ;;  %v4397_v18 = vld [vmem:[#allocation4 + $0x68c] sm:$0xf0]  ;;  %1674 = vmatmul.bf16.vlgmr.msra.gmra.mxu0 %v4776_v2  ;;  %v3418_v22 = vor.u32 %v4333_v13, %v3417_v12  ;;  %1746 = vmatpush.bf16.msrb.mxu2 %v3690_v11  ;;  %v4247_v11 = vld [vmem:[#allocation4 + $0x1e4] sm:$0xf]  ;;  %v2958_v12 = vor.u32 %v4215_v59, %v2955_v61 }
  0x4b   :  { %v3673_v17 = vld [vmem:[#allocation4 + $0x680] sm:$0xf]  ;;  %v4425_v21 = vld [vmem:[#allocation4 + $0x76c] sm:$0xf0]  ;;  %v3546_v23 = vor.u32 %v4365_v16, %v3545_v14  ;;  %1760 = vmatpush.bf16.msrb.mxu3 %v3802_v15  ;;  %v3083_v13 = vld [vmem:[#allocation4 + $0x1f0] sm:$0xf0] }
  0x4c   :  { %v3785_v20 = vld [vmem:[#allocation4 + $0x760] sm:$0xf]  ;;  %v3674_v24 = vor.u32 %v4397_v18, %v3673_v17  ;;  %v4329_v26 = vld [vmem:[#allocation4 + $0x46c] sm:$0xf0]  ;;  %1721 = vmatpush.bf16.msrb.mxu0 %v3418_v22  ;;  %v4279_v14 = vld [vmem:[#allocation4 + $0x2e4] sm:$0xf] }
  0x4d   :  { %v3401_v25 = vld [vmem:[#allocation4 + $0x460] sm:$0xf]  ;;  %v3786_v28 = vor.u32 %v4425_v21, %v3785_v20  ;;  %v4361_v29 = vld [vmem:[#allocation4 + $0x56c] sm:$0xf0]  ;;  %1734 = vmatpush.bf16.msrb.mxu1 %v3546_v23  ;;  %v3211_v15 = vld [vmem:[#allocation4 + $0x2f0] sm:$0xf0] }
  0x4e   :  { %v3529_v27 = vld [vmem:[#allocation4 + $0x560] sm:$0xf]  ;;  %v4393_v31 = vld [vmem:[#allocation4 + $0x66c] sm:$0xf0]  ;;  %v3402_v34 = vor.u32 %v4329_v26, %v3401_v25  ;;  %1747 = vmatpush.bf16.msrb.mxu2 %v3674_v24  ;;  %v2939_v17 = vld [vmem:[#allocation4 + $0xd0] sm:$0xf0]  ;;  %v3086_v26 = vor.u32 %v4247_v11, %v3083_v13 }
  0x4f   :  { %v3657_v30 = vld [vmem:[#allocation4 + $0x660] sm:$0xf]  ;;  %v4421_v33 = vld [vmem:[#allocation4 + $0x74c] sm:$0xf0]  ;;  %v3530_v35 = vor.u32 %v4361_v29, %v3529_v27  ;;  %1761 = vmatpush.bf16.msrb.mxu3 %v3786_v28  ;;  %v4311_v18 = vld [vmem:[#allocation4 + $0x3e4] sm:$0xf]  ;;  %v3214_v27 = vor.u32 %v4279_v14, %v3211_v15 }
  0x50   :  { %v3769_v32 = vld [vmem:[#allocation4 + $0x740] sm:$0xf]  ;;  %v3658_v36 = vor.u32 %v4393_v31, %v3657_v30  ;;  %v4325_v38 = vld [vmem:[#allocation4 + $0x44c] sm:$0xf0]  ;;  %1722 = vmatpush.bf16.msrb.mxu0 %v3402_v34  ;;  %v3339_v20 = vld [vmem:[#allocation4 + $0x3f0] sm:$0xf0]  ;;  %v2942_v31 = vor.u32 %v4211_v10, %v2939_v17 }
  0x51   :  { %v3385_v37 = vld [vmem:[#allocation4 + $0x440] sm:$0xf]  ;;  %v3770_v40 = vor.u32 %v4421_v33, %v3769_v32  ;;  %v4357_v41 = vld [vmem:[#allocation4 + $0x54c] sm:$0xf0]  ;;  %1735 = vmatpush.bf16.msrb.mxu1 %v3530_v35  ;;  %v130_v25 = vld [vmem:[#allocation2 + $0x38] sm:$0xff]  ;;  %v3342_v32 = vor.u32 %v4311_v18, %v3339_v20 }
  0x52   :  { %v3513_v39 = vld [vmem:[#allocation4 + $0x540] sm:$0xf]  ;;  %v4389_v43 = vld [vmem:[#allocation4 + $0x64c] sm:$0xf0]  ;;  %v3386_v46 = vor.u32 %v4325_v38, %v3385_v37  ;;  %1748 = vmatpush.bf16.msrb.mxu2 %v3658_v36  ;;  %v4207_v28 = vld [vmem:[#allocation4 + $0xa4] sm:$0xf] }
  0x53   :  { %v3641_v42 = vld [vmem:[#allocation4 + $0x640] sm:$0xf]  ;;  %v4417_v45 = vld [vmem:[#allocation4 + $0x72c] sm:$0xf0]  ;;  %v3514_v47 = vor.u32 %v4357_v41, %v3513_v39  ;;  %1762 = vmatpush.bf16.msrb.mxu3 %v3770_v40  ;;  %v4243_v29 = vld [vmem:[#allocation4 + $0x1c4] sm:$0xf]  ;;  %v4789_v41 = vpack.c.bf16 %v130_v25, %v130_v25 }
  0x54   :  { %v3753_v44 = vld [vmem:[#allocation4 + $0x720] sm:$0xf]  ;;  %v3642_v48 = vor.u32 %v4389_v43, %v3641_v42  ;;  %v4321_v50 = vld [vmem:[#allocation4 + $0x42c] sm:$0xf0]  ;;  %1723 = vmatpush.bf16.msrb.mxu0 %v3386_v46  ;;  %v128_v30 = vld [vmem:[#allocation2 + $0x28] sm:$0xff] }
  0x55   :  { %v3369_v49 = vld [vmem:[#allocation4 + $0x420] sm:$0xf]  ;;  %v3754_v53 = vor.u32 %v4417_v45, %v3753_v44  ;;  %v4353_v54 = vld [vmem:[#allocation4 + $0x52c] sm:$0xf0]  ;;  %1736 = vmatpush.bf16.msrb.mxu1 %v3514_v47  ;;  %v3067_v33 = vld [vmem:[#allocation4 + $0x1d0] sm:$0xf0]  ;;  %v4791_v42 = vpack.c.bf16 %v128_v30, %v128_v30 }
  0x56   :  { %v3497_v52 = vld [vmem:[#allocation4 + $0x520] sm:$0xf]  ;;  %v4385_v56 = vld [vmem:[#allocation4 + $0x62c] sm:$0xf0]  ;;  %v3370_v60 = vor.u32 %v4321_v50, %v3369_v49  ;;  %1749 = vmatpush.bf16.msrb.mxu2 %v3642_v48  ;;  %v4275_v34 = vld [vmem:[#allocation4 + $0x2c4] sm:$0xf]  ;;  %v3070_v43 = vor.u32 %v4243_v29, %v3067_v33 }
  0x57   :  { %v3625_v55 = vld [vmem:[#allocation4 + $0x620] sm:$0xf]  ;;  %v4413_v58 = vld [vmem:[#allocation4 + $0x70c] sm:$0xf0]  ;;  %v3498_v0 = vor.u32 %v4353_v54, %v3497_v52  ;;  %1763 = vmatpush.bf16.msrb.mxu3 %v3754_v53  ;;  %v3195_v35 = vld [vmem:[#allocation4 + $0x2d0] sm:$0xf0] }
  0x58   :  { %v3737_v57 = vld [vmem:[#allocation4 + $0x700] sm:$0xf]  ;;  %v4317_v63 = vld [vmem:[#allocation4 + $0x40c] sm:$0xf0]  ;;  %v3626_v1 = vor.u32 %v4385_v56, %v3625_v55  ;;  %1724 = vmatpush.bf16.msrb.mxu0 %v3370_v60  ;;  %v2923_v38 = vld [vmem:[#allocation4 + $0xb0] sm:$0xf0]  ;;  %v3198_v44 = vor.u32 %v4275_v34, %v3195_v35 }
  0x59   :  { %v3353_v62 = vld [vmem:[#allocation4 + $0x400] sm:$0xf]  ;;  %v4349_v4 = vld [vmem:[#allocation4 + $0x50c] sm:$0xf0]  ;;  %v3738_v6 = vor.u32 %v4413_v58, %v3737_v57  ;;  %1737 = vmatpush.bf16.msrb.mxu1 %v3498_v0  ;;  %v4307_v39 = vld [vmem:[#allocation4 + $0x3c4] sm:$0xf]  ;;  %v2926_v47 = vor.u32 %v4207_v28, %v2923_v38 }
  0x5a   :  { %v3481_v3 = vld [vmem:[#allocation4 + $0x500] sm:$0xf]  ;;  %v4381_v9 = vld [vmem:[#allocation4 + $0x60c] sm:$0xf0]  ;;  %v3354_v16 = vor.u32 %v4317_v63, %v3353_v62  ;;  %1750 = vmatpush.bf16.msrb.mxu2 %v3626_v1  ;;  %v3323_v40 = vld [vmem:[#allocation4 + $0x3d0] sm:$0xf0] }
  0x5b   :  { %v3609_v5 = vld [vmem:[#allocation4 + $0x600] sm:$0xf]  ;;  %v3482_v21 = vor.u32 %v4349_v4, %v3481_v3  ;;  %v129_v23 = vld [vmem:[#allocation2 + $0x30] sm:$0xff]  ;;  %1764 = vmatpush.bf16.msrb.mxu3 %v3738_v6  ;;  %v4203_v45 = vld [vmem:[#allocation4 + $0x84] sm:$0xf]  ;;  %v3326_v48 = vor.u32 %v4307_v39, %v3323_v40 }
  0x5c   :  { %v3610_v22 = vor.u32 %v4381_v9, %v3609_v5  ;;  %v127_v24 = vld [vmem:[#allocation2 + $0x20] sm:$0xff]  ;;  %1725 = vmatpush.bf16.msrb.mxu0 %v3354_v16  ;;  %v4785_v36 = vpack.c.bf16 %v129_v23, %v129_v23  ;;  %v3051_v49 = vld [vmem:[#allocation4 + $0x1b0] sm:$0xf0] }
  0x5d   :  { %v4787_v37 = vpack.c.bf16 %v127_v24, %v127_v24  ;;  %1738 = vmatpush.bf16.msrb.mxu1 %v3482_v21  ;;  %v4239_v46 = vld [vmem:[#allocation4 + $0x1a4] sm:$0xf]  ;;  %v3179_v52 = vld [vmem:[#allocation4 + $0x2b0] sm:$0xf0] }
  0x5e   :  { %1751 = vmatpush.bf16.msrb.mxu2 %v3610_v22  ;;  %v4271_v50 = vld [vmem:[#allocation4 + $0x2a4] sm:$0xf]  ;;  %v2907_v53 = vld [vmem:[#allocation4 + $0x90] sm:$0xf0]  ;;  %3831 = vmatmul.msk.bf16.vlgmr.msrb.gmra.mxu3 %vm1649_vm1, %v4789_v41  ;;  %v3054_v56 = vor.u32 %v4239_v46, %v3051_v49 }
  0x5f   :  { %1770 = vmatpush.bf16.msra.mxu3 %v2958_v12  ;;  %1726 = vmatmul.bf16.vlgmr.msrb.gmra.mxu0 %v4787_v37  ;;  %v4303_v54 = vld [vmem:[#allocation4 + $0x3a4] sm:$0xf]  ;;  %v3307_v55 = vld [vmem:[#allocation4 + $0x3b0] sm:$0xf0]  ;;  %v3182_v57 = vor.u32 %v4271_v50, %v3179_v52  ;;  %v2910_v60 = vor.u32 %v4203_v45, %v2907_v53  ;;  %v1146_v52 = vunpack.c.h.b16 %v4769_v19 }
  0x60   :  { %1783 = vmatpush.bf16.msra.mxu0 %v3086_v26  ;;  %1739 = vmatmul.bf16.vlgmr.msrb.gmra.mxu1 %v4791_v42  ;;  %v4199_v58 = vld [vmem:[#allocation4 + $0x64] sm:$0xf]  ;;  %v3310_v61 = vor.u32 %v4303_v54, %v3307_v55  ;;  %v3035_v62 = vld [vmem:[#allocation4 + $0x190] sm:$0xf0] }
  0x61   :  { %1796 = vmatpush.bf16.msra.mxu1 %v3214_v27  ;;  %1752 = vmatmul.bf16.vlgmr.msrb.gmra.mxu2 %v4785_v36  ;;  %v4235_v59 = vld [vmem:[#allocation4 + $0x184] sm:$0xf]  ;;  %v3163_v0 = vld [vmem:[#allocation4 + $0x290] sm:$0xf0] }
  0x62   :  { %1809 = vmatpush.bf16.msra.mxu2 %v3342_v32  ;;  %v4267_v63 = vld [vmem:[#allocation4 + $0x284] sm:$0xf]  ;;  %v2891_v1 = vld [vmem:[#allocation4 + $0x70] sm:$0xf0]  ;;  %v3038_v5 = vor.u32 %v4235_v59, %v3035_v62 }
  0x63   :  { %1771 = vmatpush.bf16.msra.mxu3 %v2942_v31  ;;  %v4299_v3 = vld [vmem:[#allocation4 + $0x384] sm:$0xf]  ;;  %v3291_v4 = vld [vmem:[#allocation4 + $0x390] sm:$0xf0]  ;;  %v3166_v6 = vor.u32 %v4267_v63, %v3163_v0  ;;  %v2894_v11 = vor.u32 %v4199_v58, %v2891_v1 }
  0x64   :  { %1784 = vmatpush.bf16.msra.mxu0 %v3070_v43  ;;  %v4195_v9 = vld [vmem:[#allocation4 + $0x44] sm:$0xf]  ;;  %v3294_v12 = vor.u32 %v4299_v3, %v3291_v4  ;;  %v3019_v13 = vld [vmem:[#allocation4 + $0x170] sm:$0xf0] }
  0x65   :  { %1797 = vmatpush.bf16.msra.mxu1 %v3198_v44  ;;  %v4231_v10 = vld [vmem:[#allocation4 + $0x164] sm:$0xf]  ;;  %v3147_v15 = vld [vmem:[#allocation4 + $0x270] sm:$0xf0] }
  0x66   :  { %1810 = vmatpush.bf16.msra.mxu2 %v3326_v48  ;;  %v4263_v14 = vld [vmem:[#allocation4 + $0x264] sm:$0xf]  ;;  %v2875_v16 = vld [vmem:[#allocation4 + $0x50] sm:$0xf0]  ;;  %v3022_v20 = vor.u32 %v4231_v10, %v3019_v13 }
  0x67   :  { %1772 = vmatpush.bf16.msra.mxu3 %v2926_v47  ;;  %v4295_v17 = vld [vmem:[#allocation4 + $0x364] sm:$0xf]  ;;  %v3275_v18 = vld [vmem:[#allocation4 + $0x370] sm:$0xf0]  ;;  %v3150_v21 = vor.u32 %v4263_v14, %v3147_v15  ;;  %v2878_v24 = vor.u32 %v4195_v9, %v2875_v16  ;;  %v1398_v9 = vpack.c.b16 %v1146_v52, %v1146_v52 }
  0x68   :  { %1785 = vmatpush.bf16.msra.mxu0 %v3054_v56  ;;  %v4191_v22 = vld [vmem:[#allocation4 + $0x24] sm:$0xf]  ;;  %v3278_v25 = vor.u32 %v4295_v17, %v3275_v18  ;;  %v3003_v26 = vld [vmem:[#allocation4 + $0x150] sm:$0xf0] }
  0x69   :  { %1798 = vmatpush.bf16.msra.mxu1 %v3182_v57  ;;  %v4227_v23 = vld [vmem:[#allocation4 + $0x144] sm:$0xf]  ;;  %v3131_v28 = vld [vmem:[#allocation4 + $0x250] sm:$0xf0] }
  0x6a   :  { %1811 = vmatpush.bf16.msra.mxu2 %v3310_v61  ;;  %v4259_v27 = vld [vmem:[#allocation4 + $0x244] sm:$0xf]  ;;  %v2859_v29 = vld [vmem:[#allocation4 + $0x30] sm:$0xf0]  ;;  %v3006_v32 = vor.u32 %v4227_v23, %v3003_v26 }
  0x6b   :  { %1773 = vmatpush.bf16.msra.mxu3 %v2910_v60  ;;  %v4291_v30 = vld [vmem:[#allocation4 + $0x344] sm:$0xf]  ;;  %v3259_v31 = vld [vmem:[#allocation4 + $0x350] sm:$0xf0]  ;;  %v3134_v33 = vor.u32 %v4259_v27, %v3131_v28  ;;  %v2862_v39 = vor.u32 %v4191_v22, %v2859_v29 }
  0x6c   :  { %1786 = vmatpush.bf16.msra.mxu0 %v3038_v5  ;;  %v4187_v34 = vld [vmem:[#allocation4 + $0x4] sm:$0xf]  ;;  %v2843_v35 = vld [vmem:[#allocation4 + $0x10] sm:$0xf0]  ;;  %v3262_v40 = vor.u32 %v4291_v30, %v3259_v31 }
  0x6d   :  { %1799 = vmatpush.bf16.msra.mxu1 %v3166_v6  ;;  %v4223_v38 = vld [vmem:[#allocation4 + $0x124] sm:$0xf]  ;;  %v2987_v43 = vld [vmem:[#allocation4 + $0x130] sm:$0xf0]  ;;  %v2846_v58 = vor.u32 %v4187_v34, %v2843_v35 }
  0x6e   :  { %1812 = vmatpush.bf16.msra.mxu2 %v3294_v12  ;;  %v4255_v44 = vld [vmem:[#allocation4 + $0x224] sm:$0xf]  ;;  %v3115_v45 = vld [vmem:[#allocation4 + $0x230] sm:$0xf0]  ;;  %v2990_v53 = vor.u32 %v4223_v38, %v2987_v43 }
  0x6f   :  { %1774 = vmatpush.bf16.msra.mxu3 %v2894_v11  ;;  %v4287_v46 = vld [vmem:[#allocation4 + $0x324] sm:$0xf]  ;;  %v3243_v47 = vld [vmem:[#allocation4 + $0x330] sm:$0xf0]  ;;  %v3118_v54 = vor.u32 %v4255_v44, %v3115_v45 }
  0x70   :  { %1787 = vmatpush.bf16.msra.mxu0 %v3022_v20  ;;  %v4343_v48 = vld [vmem:[#allocation4 + $0x4e4] sm:$0xf]  ;;  %v3467_v49 = vld [vmem:[#allocation4 + $0x4f0] sm:$0xf0]  ;;  %v3246_v59 = vor.u32 %v4287_v46, %v3243_v47 }
  0x71   :  { %1800 = vmatpush.bf16.msra.mxu1 %v3150_v21  ;;  %v4219_v50 = vld [vmem:[#allocation4 + $0x104] sm:$0xf]  ;;  %v2971_v55 = vld [vmem:[#allocation4 + $0x110] sm:$0xf0]  ;;  %v3470_v63 = vor.u32 %v4343_v48, %v3467_v49  ;;  %v1658_v21 = vsel %vm1653_vm0, %v1398_v9, 0 }
  0x72   :  { %1813 = vmatpush.bf16.msra.mxu2 %v3278_v25  ;;  %v4251_v56 = vld [vmem:[#allocation4 + $0x204] sm:$0xf]  ;;  %v3099_v57 = vld [vmem:[#allocation4 + $0x210] sm:$0xf0]  ;;  %v2974_v5 = vor.u32 %v4219_v50, %v2971_v55 }
  0x73   :  { %1775 = vmatpush.bf16.msra.mxu3 %v2878_v24  ;;  %v4283_v60 = vld [vmem:[#allocation4 + $0x304] sm:$0xf]  ;;  %v3227_v61 = vld [vmem:[#allocation4 + $0x310] sm:$0xf0]  ;;  %v3102_v6 = vor.u32 %v4251_v56, %v3099_v57 }
  0x74   :  { %1788 = vmatpush.bf16.msra.mxu0 %v3006_v32  ;;  %v4339_v62 = vld [vmem:[#allocation4 + $0x4c4] sm:$0xf]  ;;  %v3451_v0 = vld [vmem:[#allocation4 + $0x4d0] sm:$0xf0]  ;;  %v3230_v10 = vor.u32 %v4283_v60, %v3227_v61 }
  0x75   :  { %1801 = vmatpush.bf16.msra.mxu1 %v3134_v33  ;;  %v4375_v1 = vld [vmem:[#allocation4 + $0x5e4] sm:$0xf]  ;;  %v3595_v3 = vld [vmem:[#allocation4 + $0x5f0] sm:$0xf0]  ;;  %v3454_v12 = vor.u32 %v4339_v62, %v3451_v0 }
  0x76   :  { %1814 = vmatpush.bf16.msra.mxu2 %v3262_v40  ;;  %v4407_v4 = vld [vmem:[#allocation4 + $0x6e4] sm:$0xf]  ;;  %v3723_v19 = vld [vmem:[#allocation4 + $0x6f0] sm:$0xf0]  ;;  %v3598_v11 = vor.u32 %v4375_v1, %v3595_v3 }
  0x77   :  { %1776 = vmatpush.bf16.msra.mxu3 %v2862_v39  ;;  %v3726_v13 = vor.u32 %v4407_v4, %v3723_v19  ;;  %v4335_v14 = vld [vmem:[#allocation4 + $0x4a4] sm:$0xf]  ;;  %v3579_v16 = vld [vmem:[#allocation4 + $0x5d0] sm:$0xf0] }
  0x78   :  { %1789 = vmatpush.bf16.msra.mxu0 %v2990_v53  ;;  %v4371_v15 = vld [vmem:[#allocation4 + $0x5c4] sm:$0xf]  ;;  %v3435_v17 = vld [vmem:[#allocation4 + $0x4b0] sm:$0xf0] }
  0x79   :  { %1802 = vmatpush.bf16.msra.mxu1 %v3118_v54  ;;  %v4403_v18 = vld [vmem:[#allocation4 + $0x6c4] sm:$0xf]  ;;  %v3707_v20 = vld [vmem:[#allocation4 + $0x6d0] sm:$0xf0]  ;;  %v3582_v24 = vor.u32 %v4371_v15, %v3579_v16  ;;  %v3438_v25 = vor.u32 %v4335_v14, %v3435_v17 }
  0x7a   :  { %1815 = vmatpush.bf16.msra.mxu2 %v3246_v59  ;;  %v4431_v22 = vld [vmem:[#allocation4 + $0x7a4] sm:$0xf]  ;;  %v3819_v23 = vld [vmem:[#allocation4 + $0x7b0] sm:$0xf0]  ;;  %v3710_v26 = vor.u32 %v4403_v18, %v3707_v20 }
  0x7b   :  { %1777 = vmatpush.bf16.msra.mxu3 %v2846_v58  ;;  %v4331_v27 = vld [vmem:[#allocation4 + $0x484] sm:$0xf]  ;;  %v3563_v29 = vld [vmem:[#allocation4 + $0x5b0] sm:$0xf0]  ;;  %v3822_v30 = vor.u32 %v4431_v22, %v3819_v23 }
  0x7c   :  { %1790 = vmatpush.bf16.msra.mxu0 %v2974_v5  ;;  %v4367_v28 = vld [vmem:[#allocation4 + $0x5a4] sm:$0xf]  ;;  %v3419_v31 = vld [vmem:[#allocation4 + $0x490] sm:$0xf0] }
  0x7d   :  { %1803 = vmatpush.bf16.msra.mxu1 %v3102_v6  ;;  %v4399_v32 = vld [vmem:[#allocation4 + $0x6a4] sm:$0xf]  ;;  %v3691_v33 = vld [vmem:[#allocation4 + $0x6b0] sm:$0xf0]  ;;  %v3566_v38 = vor.u32 %v4367_v28, %v3563_v29  ;;  %v3422_v39 = vor.u32 %v4331_v27, %v3419_v31  ;;  %v3089_v28 = vld [vmem:[#allocation4 + $0x1e8] sm:$0xf] }
  0x7e   :  { %1816 = vmatpush.bf16.msra.mxu2 %v3230_v10  ;;  %1778 = vmatmul.bf16.vlgmr.msra.gmra.mxu3 %v4776_v2  ;;  %v4427_v34 = vld [vmem:[#allocation4 + $0x784] sm:$0xf]  ;;  %v3803_v35 = vld [vmem:[#allocation4 + $0x790] sm:$0xf0]  ;;  %v3694_v40 = vor.u32 %v4399_v32, %v3691_v33  ;;  %v4250_v29 = vld [vmem:[#allocation4 + $0x1f4] sm:$0xf0] }
  0x7f   :  { %1822 = vmatpush.bf16.msrb.mxu3 %v3470_v63  ;;  %1791 = vmatmul.bf16.vlgmr.msra.gmra.mxu0 %v4780_v8  ;;  %v4327_v43 = vld [vmem:[#allocation4 + $0x464] sm:$0xf]  ;;  %v3547_v45 = vld [vmem:[#allocation4 + $0x590] sm:$0xf0]  ;;  %v3806_v46 = vor.u32 %v4427_v34, %v3803_v35  ;;  %v2961_v31 = vld [vmem:[#allocation4 + $0xe8] sm:$0xf] }
  0x80   :  { %1835 = vmatpush.bf16.msrb.mxu0 %v3598_v11  ;;  %1804 = vmatmul.bf16.vlgmr.msra.gmra.mxu1 %v4772_v51  ;;  %v4363_v44 = vld [vmem:[#allocation4 + $0x584] sm:$0xf]  ;;  %v3403_v47 = vld [vmem:[#allocation4 + $0x470] sm:$0xf0]  ;;  %v4218_v32 = vld [vmem:[#allocation4 + $0xf4] sm:$0xf0] }
  0x81   :  { %1848 = vmatpush.bf16.msrb.mxu1 %v3726_v13  ;;  %1817 = vmatmul.bf16.vlgmr.msra.gmra.mxu2 %v4778_v7  ;;  %v4395_v48 = vld [vmem:[#allocation4 + $0x684] sm:$0xf]  ;;  %v3675_v49 = vld [vmem:[#allocation4 + $0x690] sm:$0xf0]  ;;  %v3550_v53 = vor.u32 %v4363_v44, %v3547_v45  ;;  %v3406_v54 = vor.u32 %v4327_v43, %v3403_v47  ;;  %v3090_v44 = vor.u32 %v4250_v29, %v3089_v28  ;;  %v3073_v45 = vld [vmem:[#allocation4 + $0x1c8] sm:$0xf] }
  0x82   :  { %1862 = vmatpush.bf16.msrb.mxu2 %v1658_v21  ;;  %v4423_v50 = vld [vmem:[#allocation4 + $0x764] sm:$0xf]  ;;  %v3787_v52 = vld [vmem:[#allocation4 + $0x770] sm:$0xf0]  ;;  %v3678_v55 = vor.u32 %v4395_v48, %v3675_v49  ;;  %v4282_v47 = vld [vmem:[#allocation4 + $0x2f4] sm:$0xf0]  ;;  %v2962_v48 = vor.u32 %v4218_v32, %v2961_v31 }
  0x83   :  { %1823 = vmatpush.bf16.msrb.mxu3 %v3454_v12  ;;  %v4323_v56 = vld [vmem:[#allocation4 + $0x444] sm:$0xf]  ;;  %v3531_v58 = vld [vmem:[#allocation4 + $0x570] sm:$0xf0]  ;;  %v3790_v59 = vor.u32 %v4423_v50, %v3787_v52  ;;  %v4246_v49 = vld [vmem:[#allocation4 + $0x1d4] sm:$0xf0] }
  0x84   :  { %1836 = vmatpush.bf16.msrb.mxu0 %v3582_v24  ;;  %v4359_v57 = vld [vmem:[#allocation4 + $0x564] sm:$0xf]  ;;  %v3387_v60 = vld [vmem:[#allocation4 + $0x450] sm:$0xf0]  ;;  %v3345_v50 = vld [vmem:[#allocation4 + $0x3e8] sm:$0xf] }
  0x85   :  { %1849 = vmatpush.bf16.msrb.mxu1 %v3710_v26  ;;  %v4391_v61 = vld [vmem:[#allocation4 + $0x664] sm:$0xf]  ;;  %v3659_v62 = vld [vmem:[#allocation4 + $0x670] sm:$0xf0]  ;;  %v3534_v1 = vor.u32 %v4359_v57, %v3531_v58  ;;  %v3390_v3 = vor.u32 %v4323_v56, %v3387_v60  ;;  %v4314_v52 = vld [vmem:[#allocation4 + $0x3f4] sm:$0xf0]  ;;  %v3074_v58 = vor.u32 %v4246_v49, %v3073_v45 }
  0x86   :  { %1863 = vmatpush.bf16.msrb.mxu2 %v3822_v30  ;;  %v4419_v63 = vld [vmem:[#allocation4 + $0x744] sm:$0xf]  ;;  %v3771_v0 = vld [vmem:[#allocation4 + $0x750] sm:$0xf0]  ;;  %v3662_v4 = vor.u32 %v4391_v61, %v3659_v62  ;;  %v3057_v60 = vld [vmem:[#allocation4 + $0x1a8] sm:$0xf] }
  0x87   :  { %1824 = vmatpush.bf16.msrb.mxu3 %v3438_v25  ;;  %v4319_v19 = vld [vmem:[#allocation4 + $0x424] sm:$0xf]  ;;  %v3515_v6 = vld [vmem:[#allocation4 + $0x550] sm:$0xf0]  ;;  %v3774_v9 = vor.u32 %v4419_v63, %v3771_v0  ;;  %v3201_v61 = vld [vmem:[#allocation4 + $0x2c8] sm:$0xf] }
  0x88   :  { %1837 = vmatpush.bf16.msrb.mxu0 %v3566_v38  ;;  %v4355_v5 = vld [vmem:[#allocation4 + $0x544] sm:$0xf]  ;;  %v3371_v10 = vld [vmem:[#allocation4 + $0x430] sm:$0xf0]  ;;  %v4278_v62 = vld [vmem:[#allocation4 + $0x2d4] sm:$0xf0] }
  0x89   :  { %1850 = vmatpush.bf16.msrb.mxu1 %v3694_v40  ;;  %v4387_v11 = vld [vmem:[#allocation4 + $0x644] sm:$0xf]  ;;  %v3643_v12 = vld [vmem:[#allocation4 + $0x650] sm:$0xf0]  ;;  %v3518_v15 = vor.u32 %v4355_v5, %v3515_v6  ;;  %v3374_v17 = vor.u32 %v4319_v19, %v3371_v10  ;;  %v4242_v0 = vld [vmem:[#allocation4 + $0x1b4] sm:$0xf0]  ;;  %v3202_v5 = vor.u32 %v4278_v62, %v3201_v61 }
  0x8a   :  { %1864 = vmatpush.bf16.msrb.mxu2 %v3806_v46  ;;  %v4415_v13 = vld [vmem:[#allocation4 + $0x724] sm:$0xf]  ;;  %v3755_v14 = vld [vmem:[#allocation4 + $0x730] sm:$0xf0]  ;;  %v3646_v18 = vor.u32 %v4387_v11, %v3643_v12  ;;  %v3217_v46 = vld [vmem:[#allocation4 + $0x2e8] sm:$0xf]  ;;  %v3058_v6 = vor.u32 %v4242_v0, %v3057_v60 }
  0x8b   :  { %1825 = vmatpush.bf16.msrb.mxu3 %v3422_v39  ;;  %v4315_v16 = vld [vmem:[#allocation4 + $0x404] sm:$0xf]  ;;  %v3355_v20 = vld [vmem:[#allocation4 + $0x410] sm:$0xf0]  ;;  %v3758_v23 = vor.u32 %v4415_v13, %v3755_v14  ;;  %v3218_v57 = vor.u32 %v4282_v47, %v3217_v46  ;;  %v4210_v19 = vld [vmem:[#allocation4 + $0xb4] sm:$0xf0] }
  0x8c   :  { %1838 = vmatpush.bf16.msrb.mxu0 %v3550_v53  ;;  %v4351_v21 = vld [vmem:[#allocation4 + $0x524] sm:$0xf]  ;;  %v3499_v22 = vld [vmem:[#allocation4 + $0x530] sm:$0xf0]  ;;  %v3358_v34 = vor.u32 %v4315_v16, %v3355_v20  ;;  %v3041_v10 = vld [vmem:[#allocation4 + $0x188] sm:$0xf] }
  0x8d   :  { %1851 = vmatpush.bf16.msrb.mxu1 %v3678_v55  ;;  %v4383_v24 = vld [vmem:[#allocation4 + $0x624] sm:$0xf]  ;;  %v3627_v25 = vld [vmem:[#allocation4 + $0x630] sm:$0xf0]  ;;  %v3502_v30 = vor.u32 %v4351_v21, %v3499_v22  ;;  %v4214_v55 = vld [vmem:[#allocation4 + $0xd4] sm:$0xf0] }
  0x8e   :  { %1865 = vmatpush.bf16.msrb.mxu2 %v3790_v59  ;;  %v4411_v26 = vld [vmem:[#allocation4 + $0x704] sm:$0xf]  ;;  %v3739_v27 = vld [vmem:[#allocation4 + $0x710] sm:$0xf0]  ;;  %v3630_v35 = vor.u32 %v4383_v24, %v3627_v25  ;;  %v3346_v59 = vor.u32 %v4314_v52, %v3345_v50  ;;  %v3185_v11 = vld [vmem:[#allocation4 + $0x2a8] sm:$0xf] }
  0x8f   :  { %1826 = vmatpush.bf16.msrb.mxu3 %v3406_v54  ;;  %v4347_v33 = vld [vmem:[#allocation4 + $0x504] sm:$0xf]  ;;  %v3483_v38 = vld [vmem:[#allocation4 + $0x510] sm:$0xf0]  ;;  %v3742_v43 = vor.u32 %v4411_v26, %v3739_v27  ;;  %v2945_v54 = vld [vmem:[#allocation4 + $0xc8] sm:$0xf] }
  0x90   :  { %1839 = vmatpush.bf16.msrb.mxu0 %v3534_v1  ;;  %v4379_v39 = vld [vmem:[#allocation4 + $0x604] sm:$0xf]  ;;  %v3611_v40 = vld [vmem:[#allocation4 + $0x610] sm:$0xf0]  ;;  %v3486_v53 = vor.u32 %v4347_v33, %v3483_v38  ;;  %v2946_v63 = vor.u32 %v4214_v55, %v2945_v54  ;;  %v3329_v1 = vld [vmem:[#allocation4 + $0x3c8] sm:$0xf] }
  0x91   :  { %1852 = vmatpush.bf16.msrb.mxu1 %v3662_v4  ;;  %v3614_v56 = vor.u32 %v4379_v39, %v3611_v40  ;;  %v2929_v4 = vld [vmem:[#allocation4 + $0xa8] sm:$0xf]  ;;  %v4274_v12 = vld [vmem:[#allocation4 + $0x2b4] sm:$0xf0] }
  0x92   :  { %1866 = vmatpush.bf16.msrb.mxu2 %v3774_v9  ;;  %v2930_v13 = vor.u32 %v4210_v19, %v2929_v4  ;;  %v4238_v14 = vld [vmem:[#allocation4 + $0x194] sm:$0xf0]  ;;  %v3186_v20 = vor.u32 %v4274_v12, %v3185_v11  ;;  %v3169_v24 = vld [vmem:[#allocation4 + $0x288] sm:$0xf] }
  0x93   :  { %1827 = vmatpush.bf16.msrb.mxu3 %v3390_v3  ;;  %v4310_v3 = vld [vmem:[#allocation4 + $0x3d4] sm:$0xf0]  ;;  %v3042_v21 = vor.u32 %v4238_v14, %v3041_v10  ;;  %v3297_v28 = vld [vmem:[#allocation4 + $0x388] sm:$0xf] }
  0x94   :  { %1840 = vmatpush.bf16.msrb.mxu0 %v3518_v15  ;;  %v3330_v9 = vor.u32 %v4310_v3, %v3329_v1  ;;  %v3313_v15 = vld [vmem:[#allocation4 + $0x3a8] sm:$0xf]  ;;  %v4306_v16 = vld [vmem:[#allocation4 + $0x3b4] sm:$0xf0] }
  0x95   :  { %1853 = vmatpush.bf16.msrb.mxu1 %v3646_v18  ;;  %v4206_v18 = vld [vmem:[#allocation4 + $0x94] sm:$0xf0]  ;;  %v3314_v22 = vor.u32 %v4306_v16, %v3313_v15  ;;  %v3153_v38 = vld [vmem:[#allocation4 + $0x268] sm:$0xf] }
  0x96   :  { %1867 = vmatpush.bf16.msrb.mxu2 %v3758_v23  ;;  %v3025_v23 = vld [vmem:[#allocation4 + $0x168] sm:$0xf]  ;;  %v4270_v25 = vld [vmem:[#allocation4 + $0x294] sm:$0xf0] }
  0x97   :  { %1828 = vmatpush.bf16.msrb.mxu3 %v3374_v17  ;;  %v2913_v17 = vld [vmem:[#allocation4 + $0x88] sm:$0xf]  ;;  %v4234_v27 = vld [vmem:[#allocation4 + $0x174] sm:$0xf0]  ;;  %v3170_v32 = vor.u32 %v4270_v25, %v3169_v24 }
  0x98   :  { %1841 = vmatpush.bf16.msrb.mxu0 %v3502_v30  ;;  %v2914_v26 = vor.u32 %v4206_v18, %v2913_v17  ;;  %v4302_v29 = vld [vmem:[#allocation4 + $0x394] sm:$0xf0]  ;;  %v2897_v30 = vld [vmem:[#allocation4 + $0x68] sm:$0xf]  ;;  %v3026_v33 = vor.u32 %v4234_v27, %v3025_v23 }
  0x99   :  { %1854 = vmatpush.bf16.msrb.mxu1 %v3630_v35  ;;  %v4202_v31 = vld [vmem:[#allocation4 + $0x74] sm:$0xf0]  ;;  %v3009_v35 = vld [vmem:[#allocation4 + $0x148] sm:$0xf] }
  0x9a   :  { %1868 = vmatpush.bf16.msrb.mxu2 %v3742_v43  ;;  %v4266_v39 = vld [vmem:[#allocation4 + $0x274] sm:$0xf0]  ;;  %v2898_v40 = vor.u32 %v4202_v31, %v2897_v30  ;;  %v2881_v46 = vld [vmem:[#allocation4 + $0x48] sm:$0xf] }
  0x9b   :  { %1829 = vmatpush.bf16.msrb.mxu3 %v3358_v34  ;;  %v3298_v34 = vor.u32 %v4302_v29, %v3297_v28  ;;  %v4230_v43 = vld [vmem:[#allocation4 + $0x154] sm:$0xf0]  ;;  %v2993_v49 = vld [vmem:[#allocation4 + $0x128] sm:$0xf] }
  0x9c   :  { %1842 = vmatpush.bf16.msrb.mxu0 %v3486_v53  ;;  %v4298_v45 = vld [vmem:[#allocation4 + $0x374] sm:$0xf0]  ;;  %v3010_v50 = vor.u32 %v4230_v43, %v3009_v35  ;;  %v3137_v54 = vld [vmem:[#allocation4 + $0x248] sm:$0xf] }
  0x9d   :  { %1855 = vmatpush.bf16.msrb.mxu1 %v3614_v56  ;;  %3832 = vmatmul.msk.bf16.vlgmr.msrb.gmra.mxu2 %vm1649_vm1, %v4789_v41  ;;  %v4198_v47 = vld [vmem:[#allocation4 + $0x54] sm:$0xf0]  ;;  %v2865_v60 = vld [vmem:[#allocation4 + $0x28] sm:$0xf] }
  0x9e   :  { %1874 = vmatpush.bf16.msra.mxu2 %v2962_v48  ;;  %1830 = vmatmul.bf16.vlgmr.msrb.gmra.mxu3 %v4787_v37  ;;  %v3154_v48 = vor.u32 %v4266_v39, %v3153_v38  ;;  %v4226_v53 = vld [vmem:[#allocation4 + $0x134] sm:$0xf0]  ;;  %v2882_v56 = vor.u32 %v4198_v47, %v2881_v46  ;;  %v2849_v1 = vld [vmem:[#allocation4 + $0x8] sm:$0xf] }
  0x9f   :  { %1887 = vmatpush.bf16.msra.mxu3 %v3090_v44  ;;  %1843 = vmatmul.bf16.vlgmr.msrb.gmra.mxu0 %v4791_v42  ;;  %v3281_v44 = vld [vmem:[#allocation4 + $0x368] sm:$0xf]  ;;  %v4262_v55 = vld [vmem:[#allocation4 + $0x254] sm:$0xf0] }
  0xa0   :  { %1900 = vmatpush.bf16.msra.mxu0 %v3218_v57  ;;  %1856 = vmatmul.bf16.vlgmr.msrb.gmra.mxu1 %v4785_v36  ;;  %v3282_v52 = vor.u32 %v4298_v45, %v3281_v44  ;;  %v3265_v57 = vld [vmem:[#allocation4 + $0x348] sm:$0xf]  ;;  %v4194_v61 = vld [vmem:[#allocation4 + $0x34] sm:$0xf0]  ;;  %v3138_v62 = vor.u32 %v4262_v55, %v3137_v54 }
  0xa1   :  { %1913 = vmatpush.bf16.msra.mxu1 %v3346_v59  ;;  %v4809_v59 = vld [vmem:[#allocation4 + $0x7c8] sm:$0xff]  ;;  %v4258_v19 = vld [vmem:[#allocation4 + $0x234] sm:$0xf0] }
  0xa2   :  { %1875 = vmatpush.bf16.msra.mxu2 %v2946_v63  ;;  %v2994_v63 = vor.u32 %v4226_v53, %v2993_v49  ;;  %v2977_v3 = vld [vmem:[#allocation4 + $0x108] sm:$0xf]  ;;  %v4290_v11 = vld [vmem:[#allocation4 + $0x334] sm:$0xf0] }
  0xa3   :  { %1888 = vmatpush.bf16.msra.mxu3 %v3074_v58  ;;  %v4294_v58 = vld [vmem:[#allocation4 + $0x354] sm:$0xf0]  ;;  %v3121_v4 = vld [vmem:[#allocation4 + $0x228] sm:$0xf] }
  0xa4   :  { %1901 = vmatpush.bf16.msra.mxu0 %v3202_v5  ;;  %v3266_v0 = vor.u32 %v4294_v58, %v3265_v57  ;;  %v1147_v5 = vunpack.c.l.b16 %v4809_v59  ;;  %v3249_v10 = vld [vmem:[#allocation4 + $0x328] sm:$0xf]  ;;  %v4190_v12 = vld [vmem:[#allocation4 + $0x14] sm:$0xf0]  ;;  %v3122_v15 = vor.u32 %v4258_v19, %v3121_v4 }
  0xa5   :  { %1914 = vmatpush.bf16.msra.mxu1 %v3330_v9  ;;  %v4222_v9 = vld [vmem:[#allocation4 + $0x114] sm:$0xf0]  ;;  %v3473_v16 = vld [vmem:[#allocation4 + $0x4e8] sm:$0xf]  ;;  %v2850_v25 = vor.u32 %v4190_v12, %v2849_v1 }
  0xa6   :  { %1876 = vmatpush.bf16.msra.mxu2 %v2930_v13  ;;  %v3601_v13 = vld [vmem:[#allocation4 + $0x5e8] sm:$0xf]  ;;  %v4378_v14 = vld [vmem:[#allocation4 + $0x5f4] sm:$0xf0]  ;;  %v2978_v18 = vor.u32 %v4222_v9, %v2977_v3  ;;  %v1399_v24 = vpack.c.b16 %v1147_v5, %v1147_v5 }
  0xa7   :  { %1889 = vmatpush.bf16.msra.mxu3 %v3058_v6  ;;  %v2866_v6 = vor.u32 %v4194_v61, %v2865_v60  ;;  %v4346_v17 = vld [vmem:[#allocation4 + $0x4f4] sm:$0xf0]  ;;  %v3233_v23 = vld [vmem:[#allocation4 + $0x308] sm:$0xf] }
  0xa8   :  { %1902 = vmatpush.bf16.msra.mxu0 %v3186_v20  ;;  %v3250_v20 = vor.u32 %v4290_v11, %v3249_v10  ;;  %v4286_v27 = vld [vmem:[#allocation4 + $0x314] sm:$0xf0]  ;;  %v3729_v28 = vld [vmem:[#allocation4 + $0x6e8] sm:$0xf]  ;;  %v3474_v30 = vor.u32 %v4346_v17, %v3473_v16 }
  0xa9   :  { %1915 = vmatpush.bf16.msra.mxu1 %v3314_v22  ;;  %v4254_v22 = vld [vmem:[#allocation4 + $0x214] sm:$0xf0]  ;;  %v3585_v31 = vld [vmem:[#allocation4 + $0x5c8] sm:$0xf]  ;;  %v3234_v38 = vor.u32 %v4286_v27, %v3233_v23 }
  0xaa   :  { %1877 = vmatpush.bf16.msra.mxu2 %v2914_v26  ;;  %v3602_v26 = vor.u32 %v4378_v14, %v3601_v13  ;;  %v4410_v29 = vld [vmem:[#allocation4 + $0x6f4] sm:$0xf0]  ;;  %v3569_v44 = vld [vmem:[#allocation4 + $0x5a8] sm:$0xf] }
  0xab   :  { %1890 = vmatpush.bf16.msra.mxu3 %v3042_v21  ;;  %v3105_v21 = vld [vmem:[#allocation4 + $0x208] sm:$0xf]  ;;  %v4342_v35 = vld [vmem:[#allocation4 + $0x4d4] sm:$0xf0]  ;;  %v3730_v39 = vor.u32 %v4410_v29, %v3729_v28 }
  0xac   :  { %1903 = vmatpush.bf16.msra.mxu0 %v3170_v32  ;;  %v4374_v32 = vld [vmem:[#allocation4 + $0x5d4] sm:$0xf0]  ;;  %v3713_v45 = vld [vmem:[#allocation4 + $0x6c8] sm:$0xf] }
  0xad   :  { %1916 = vmatpush.bf16.msra.mxu1 %v3298_v34  ;;  %v3457_v34 = vld [vmem:[#allocation4 + $0x4c8] sm:$0xf]  ;;  %v3586_v43 = vor.u32 %v4374_v32, %v3585_v31  ;;  %v4406_v46 = vld [vmem:[#allocation4 + $0x6d4] sm:$0xf0] }
  0xae   :  { %1878 = vmatpush.bf16.msra.mxu2 %v2898_v40  ;;  %v1661_v40 = vsel %vm1653_vm0, %v1399_v24, 0  ;;  %v3458_v47 = vor.u32 %v4342_v35, %v3457_v34  ;;  %v3825_v49 = vld [vmem:[#allocation4 + $0x7a8] sm:$0xf]  ;;  %v4338_v53 = vld [vmem:[#allocation4 + $0x4b4] sm:$0xf0]  ;;  %v3714_v54 = vor.u32 %v4406_v46, %v3713_v45 }
  0xaf   :  { %1891 = vmatpush.bf16.msra.mxu3 %v3026_v33  ;;  %v3106_v33 = vor.u32 %v4254_v22, %v3105_v21  ;;  %v3553_v57 = vld [vmem:[#allocation4 + $0x588] sm:$0xf]  ;;  %v4402_v60 = vld [vmem:[#allocation4 + $0x6b4] sm:$0xf0] }
  0xb0   :  { %1904 = vmatpush.bf16.msra.mxu0 %v3154_v48  ;;  %v4370_v48 = vld [vmem:[#allocation4 + $0x5b4] sm:$0xf0]  ;;  %v3697_v58 = vld [vmem:[#allocation4 + $0x6a8] sm:$0xf] }
  0xb1   :  { %1917 = vmatpush.bf16.msra.mxu1 %v3282_v52  ;;  %v3441_v52 = vld [vmem:[#allocation4 + $0x4a8] sm:$0xf]  ;;  %v3570_v55 = vor.u32 %v4370_v48, %v3569_v44  ;;  %v4334_v3 = vld [vmem:[#allocation4 + $0x494] sm:$0xf0]  ;;  %v3698_v4 = vor.u32 %v4402_v60, %v3697_v58 }
  0xb2   :  { %1879 = vmatpush.bf16.msra.mxu2 %v2882_v56  ;;  %v3442_v61 = vor.u32 %v4338_v53, %v3441_v52  ;;  %v3425_v1 = vld [vmem:[#allocation4 + $0x488] sm:$0xf]  ;;  %v4398_v10 = vld [vmem:[#allocation4 + $0x694] sm:$0xf0] }
  0xb3   :  { %1892 = vmatpush.bf16.msra.mxu3 %v3010_v50  ;;  %v4434_v50 = vld [vmem:[#allocation4 + $0x7b4] sm:$0xf0]  ;;  %v3681_v9 = vld [vmem:[#allocation4 + $0x688] sm:$0xf]  ;;  %v3426_v11 = vor.u32 %v4334_v3, %v3425_v1  ;;  %v4248_v1 = vld [vmem:[#allocation4 + $0x1ec] sm:$0xf] }
  0xb4   :  { %1905 = vmatpush.bf16.msra.mxu0 %v3138_v62  ;;  %v3826_v56 = vor.u32 %v4434_v50, %v3825_v49  ;;  %v4366_v62 = vld [vmem:[#allocation4 + $0x594] sm:$0xf0]  ;;  %v3793_v13 = vld [vmem:[#allocation4 + $0x768] sm:$0xf]  ;;  %v3682_v17 = vor.u32 %v4398_v10, %v3681_v9 }
  0xb5   :  { %1918 = vmatpush.bf16.msra.mxu1 %v3266_v0  ;;  %v4430_v0 = vld [vmem:[#allocation4 + $0x794] sm:$0xf0]  ;;  %v3554_v19 = vor.u32 %v4366_v62, %v3553_v57  ;;  %v3521_v21 = vld [vmem:[#allocation4 + $0x548] sm:$0xf] }
  0xb6   :  { %1880 = vmatpush.bf16.msra.mxu2 %v2866_v6  ;;  %v3537_v6 = vld [vmem:[#allocation4 + $0x568] sm:$0xf]  ;;  %v4362_v12 = vld [vmem:[#allocation4 + $0x574] sm:$0xf0] }
  0xb7   :  { %1893 = vmatpush.bf16.msra.mxu3 %v2994_v63  ;;  %v3809_v63 = vld [vmem:[#allocation4 + $0x788] sm:$0xf]  ;;  %v4426_v14 = vld [vmem:[#allocation4 + $0x774] sm:$0xf0] }
  0xb8   :  { %1906 = vmatpush.bf16.msra.mxu0 %v3122_v15  ;;  %v3810_v5 = vor.u32 %v4430_v0, %v3809_v63  ;;  %v3409_v15 = vld [vmem:[#allocation4 + $0x468] sm:$0xf]  ;;  %v4330_v16 = vld [vmem:[#allocation4 + $0x474] sm:$0xf0]  ;;  %v4216_v63 = vld [vmem:[#allocation4 + $0xec] sm:$0xf] }
  0xb9   :  { %1919 = vmatpush.bf16.msra.mxu1 %v3250_v20  ;;  %v3794_v20 = vor.u32 %v4426_v14, %v3793_v13  ;;  %v3665_v22 = vld [vmem:[#allocation4 + $0x668] sm:$0xf]  ;;  %v4394_v23 = vld [vmem:[#allocation4 + $0x674] sm:$0xf0]  ;;  %v3410_v24 = vor.u32 %v4330_v16, %v3409_v15  ;;  %v2963_v0 = vld [vmem:[#allocation4 + $0xf8] sm:$0xf0] }
  0xba   :  { %1881 = vmatpush.bf16.msra.mxu2 %v2850_v25  ;;  %v4358_v25 = vld [vmem:[#allocation4 + $0x554] sm:$0xf0]  ;;  %v3393_v28 = vld [vmem:[#allocation4 + $0x448] sm:$0xf]  ;;  %v2966_v14 = vor.u32 %v4216_v63, %v2963_v0  ;;  %v4312_v15 = vld [vmem:[#allocation4 + $0x3ec] sm:$0xf] }
  0xbb   :  { %1894 = vmatpush.bf16.msra.mxu3 %v2978_v18  ;;  %v3538_v18 = vor.u32 %v4362_v12, %v3537_v6  ;;  %v4422_v27 = vld [vmem:[#allocation4 + $0x754] sm:$0xf0]  ;;  %v3522_v31 = vor.u32 %v4358_v25, %v3521_v21  ;;  %v3649_v34 = vld [vmem:[#allocation4 + $0x648] sm:$0xf]  ;;  %v3347_v16 = vld [vmem:[#allocation4 + $0x3f8] sm:$0xf0] }
  0xbc   :  { %1907 = vmatpush.bf16.msra.mxu0 %v3106_v33  ;;  %v4326_v29 = vld [vmem:[#allocation4 + $0x454] sm:$0xf0]  ;;  %v3505_v33 = vld [vmem:[#allocation4 + $0x528] sm:$0xf]  ;;  %v4212_v21 = vld [vmem:[#allocation4 + $0xcc] sm:$0xf] }
  0xbd   :  { %1920 = vmatpush.bf16.msra.mxu1 %v3234_v38  ;;  %1882 = vmatmul.bf16.vlgmr.msra.gmra.mxu2 %v4776_v2  ;;  %v4390_v35 = vld [vmem:[#allocation4 + $0x654] sm:$0xf0]  ;;  %v3394_v38 = vor.u32 %v4326_v29, %v3393_v28  ;;  %v3377_v45 = vld [vmem:[#allocation4 + $0x428] sm:$0xf]  ;;  %v3203_v28 = vld [vmem:[#allocation4 + $0x2d8] sm:$0xf0] }
  0xbe   :  { %1926 = vmatpush.bf16.msrb.mxu2 %v3474_v30  ;;  %1895 = vmatmul.bf16.vlgmr.msra.gmra.mxu3 %v4780_v8  ;;  %v3666_v30 = vor.u32 %v4394_v23, %v3665_v22  ;;  %v4322_v46 = vld [vmem:[#allocation4 + $0x434] sm:$0xf0]  ;;  %v3650_v48 = vor.u32 %v4390_v35, %v3649_v34  ;;  %v3361_v53 = vld [vmem:[#allocation4 + $0x408] sm:$0xf]  ;;  %v2947_v22 = vld [vmem:[#allocation4 + $0xd8] sm:$0xf0] }
  0xbf   :  { %1939 = vmatpush.bf16.msrb.mxu3 %v3602_v26  ;;  %1908 = vmatmul.bf16.vlgmr.msra.gmra.mxu0 %v4772_v51  ;;  %v3777_v26 = vld [vmem:[#allocation4 + $0x748] sm:$0xf]  ;;  %v4386_v57 = vld [vmem:[#allocation4 + $0x634] sm:$0xf0]  ;;  %v3378_v58 = vor.u32 %v4322_v46, %v3377_v45  ;;  %v4244_v23 = vld [vmem:[#allocation4 + $0x1cc] sm:$0xf] }
  0xc0   :  { %1952 = vmatpush.bf16.msrb.mxu0 %v3730_v39  ;;  %1921 = vmatmul.bf16.vlgmr.msra.gmra.mxu1 %v4778_v7  ;;  %v3778_v32 = vor.u32 %v4422_v27, %v3777_v26  ;;  %v4354_v39 = vld [vmem:[#allocation4 + $0x534] sm:$0xf0]  ;;  %v3617_v10 = vld [vmem:[#allocation4 + $0x608] sm:$0xf]  ;;  %v3075_v26 = vld [vmem:[#allocation4 + $0x1d8] sm:$0xf0] }
  0xc1   :  { %1966 = vmatpush.bf16.msrb.mxu1 %v1661_v40  ;;  %v3761_v40 = vld [vmem:[#allocation4 + $0x728] sm:$0xf]  ;;  %v3506_v50 = vor.u32 %v4354_v39, %v3505_v33  ;;  %v4350_v60 = vld [vmem:[#allocation4 + $0x514] sm:$0xf0]  ;;  %v4276_v27 = vld [vmem:[#allocation4 + $0x2cc] sm:$0xf]  ;;  %v3078_v34 = vor.u32 %v4244_v23, %v3075_v26 }
  0xc2   :  { %1927 = vmatpush.bf16.msrb.mxu2 %v3458_v47  ;;  %v4819_v47 = vpop.f32.mrf.mxu1  ;;  %v4414_v62 = vld [vmem:[#allocation4 + $0x714] sm:$0xf0]  ;;  %v3331_v33 = vld [vmem:[#allocation4 + $0x3d8] sm:$0xf0]  ;;  %v3206_v35 = vor.u32 %v4276_v27, %v3203_v28  ;;  %v4272_v45 = vld [vmem:[#allocation4 + $0x2ac] sm:$0xf] }
  0xc3   :  { %1940 = vmatpush.bf16.msrb.mxu3 %v3586_v43  ;;  %v4418_v43 = vld [vmem:[#allocation4 + $0x734] sm:$0xf0]  ;;  %v2931_v39 = vld [vmem:[#allocation4 + $0xb8] sm:$0xf0]  ;;  %v4260_v27 = vld [vmem:[#allocation4 + $0x24c] sm:$0xf] }
  0xc4   :  { %1953 = vmatpush.bf16.msrb.mxu0 %v3714_v54  ;;  %v3762_v52 = vor.u32 %v4418_v43, %v3761_v40  ;;  %v4318_v54 = vld [vmem:[#allocation4 + $0x414] sm:$0xf0]  ;;  %v4240_v40 = vld [vmem:[#allocation4 + $0x1ac] sm:$0xf]  ;;  %v3059_v43 = vld [vmem:[#allocation4 + $0x1b8] sm:$0xf0] }
  0xc5   :  { %1967 = vmatpush.bf16.msrb.mxu1 %v3826_v56  ;;  %v3633_v56 = vld [vmem:[#allocation4 + $0x628] sm:$0xf]  ;;  %v4823_v12 = vpop.f32.mrf.mxu3  ;;  %v3362_v13 = vor.u32 %v4318_v54, %v3361_v53  ;;  %v3187_v46 = vld [vmem:[#allocation4 + $0x2b8] sm:$0xf0]  ;;  %v4304_v53 = vld [vmem:[#allocation4 + $0x3ac] sm:$0xf] }
  0xc6   :  { %1928 = vmatpush.bf16.msrb.mxu2 %v3442_v61  ;;  %v4821_v49 = vpop.f32.mrf.mxu2  ;;  %v3745_v61 = vld [vmem:[#allocation4 + $0x708] sm:$0xf]  ;;  %v3634_v3 = vor.u32 %v4386_v57, %v3633_v56  ;;  %v3315_v54 = vld [vmem:[#allocation4 + $0x3b8] sm:$0xf0]  ;;  %v3190_v56 = vor.u32 %v4272_v45, %v3187_v46  ;;  %v4204_v57 = vld [vmem:[#allocation4 + $0x8c] sm:$0xf] }
  0xc7   :  { %1941 = vmatpush.bf16.msrb.mxu3 %v3570_v55  ;;  %v4817_v44 = vpop.f32.mrf.mxu0  ;;  %v3489_v55 = vld [vmem:[#allocation4 + $0x508] sm:$0xf]  ;;  %v3746_v9 = vor.u32 %v4414_v62, %v3745_v61  ;;  %v3043_v61 = vld [vmem:[#allocation4 + $0x198] sm:$0xf0]  ;;  %v4268_v62 = vld [vmem:[#allocation4 + $0x28c] sm:$0xf]  ;;  %v3318_v0 = vor.u32 %v4304_v53, %v3315_v54 }
  0xc8   :  { %1954 = vmatpush.bf16.msrb.mxu0 %v3698_v4  ;;  %v3091_v4 = vld [vmem:[#allocation4 + $0x1f8] sm:$0xf0]  ;;  %v3490_v6 = vor.u32 %v4350_v60, %v3489_v55  ;;  %v3062_v55 = vor.u32 %v4240_v40, %v3059_v43  ;;  %v4236_v60 = vld [vmem:[#allocation4 + $0x18c] sm:$0xf] }
  0xc9   :  { %1968 = vmatpush.bf16.msrb.mxu1 %v3810_v5  ;;  %v3219_v5 = vld [vmem:[#allocation4 + $0x2f8] sm:$0xf0]  ;;  %v4224_v43 = vld [vmem:[#allocation4 + $0x12c] sm:$0xf] }
  0xca   :  { %1929 = vmatpush.bf16.msrb.mxu2 %v3426_v11  ;;  %v4382_v11 = vld [vmem:[#allocation4 + $0x614] sm:$0xf0]  ;;  %v3171_v63 = vld [vmem:[#allocation4 + $0x298] sm:$0xf0]  ;;  %v4256_v46 = vld [vmem:[#allocation4 + $0x22c] sm:$0xf] }
  0xcb   :  { %1942 = vmatpush.bf16.msrb.mxu3 %v3554_v19  ;;  %v4280_v19 = vld [vmem:[#allocation4 + $0x2ec] sm:$0xf]  ;;  %v3618_v25 = vor.u32 %v4382_v11, %v3617_v10  ;;  %v3027_v11 = vld [vmem:[#allocation4 + $0x178] sm:$0xf0] }
  0xcc   :  { %1955 = vmatpush.bf16.msrb.mxu0 %v3682_v17  ;;  %v4232_v10 = vld [vmem:[#allocation4 + $0x16c] sm:$0xf]  ;;  %v2883_v23 = vld [vmem:[#allocation4 + $0x58] sm:$0xf0] }
  0xcd   :  { %1969 = vmatpush.bf16.msrb.mxu1 %v3794_v20  ;;  %v3222_v20 = vor.u32 %v4280_v19, %v3219_v5  ;;  %v3046_v19 = vor.u32 %v4236_v60, %v3043_v61  ;;  %v3174_v5 = vor.u32 %v4268_v62, %v3171_v63  ;;  %v3011_v26 = vld [vmem:[#allocation4 + $0x158] sm:$0xf0]  ;;  %v4188_v53 = vld [vmem:[#allocation4 + $0xc] sm:$0xf] }
  0xce   :  { %1930 = vmatpush.bf16.msrb.mxu2 %v3410_v24  ;;  %v1690_v24 = vpop.f32.mrf.mxu1  ;;  %v1703_v29 = vpop.f32.mrf.mxu2  ;;  %v3139_v28 = vld [vmem:[#allocation4 + $0x258] sm:$0xf0]  ;;  %v4220_v63 = vld [vmem:[#allocation4 + $0x10c] sm:$0xf] }
  0xcf   :  { %1943 = vmatpush.bf16.msrb.mxu3 %v3538_v18  ;;  %v1677_v17 = vpop.f32.mrf.mxu0  ;;  %v3094_v18 = vor.u32 %v4248_v1, %v3091_v4  ;;  %v3299_v4 = vld [vmem:[#allocation4 + $0x398] sm:$0xf0]  ;;  %v4228_v24 = vld [vmem:[#allocation4 + $0x14c] sm:$0xf] }
  0xd0   :  { %1956 = vmatpush.bf16.msrb.mxu0 %v3666_v30  ;;  %v3350_v30 = vor.u32 %v4312_v15, %v3347_v16  ;;  %v4296_v17 = vld [vmem:[#allocation4 + $0x36c] sm:$0xf]  ;;  %v2867_v40 = vld [vmem:[#allocation4 + $0x38] sm:$0xf0] }
  0xd1   :  { %1970 = vmatpush.bf16.msrb.mxu1 %v3778_v32  ;;  %v4308_v32 = vld [vmem:[#allocation4 + $0x3cc] sm:$0xf]  ;;  %v2995_v45 = vld [vmem:[#allocation4 + $0x138] sm:$0xf0] }
  0xd2   :  { %1931 = vmatpush.bf16.msrb.mxu2 %v3394_v38  ;;  %v4208_v38 = vld [vmem:[#allocation4 + $0xac] sm:$0xf]  ;;  %v2998_v61 = vor.u32 %v4224_v43, %v2995_v45  ;;  %v3885_v43 = vld [vmem:[#allocation7 + $0x60] sm:$0xf]  ;;  %v4448_v45 = vld [vmem:[#allocation7 + $0x64] sm:$0xf0] }
  0xd3   :  { %1944 = vmatpush.bf16.msrb.mxu3 %v3522_v31  ;;  %v2950_v31 = vor.u32 %v4212_v21, %v2947_v22  ;;  %v4196_v22 = vld [vmem:[#allocation4 + $0x4c] sm:$0xf] }
  0xd4   :  { %1957 = vmatpush.bf16.msrb.mxu0 %v3650_v48  ;;  %v3334_v48 = vor.u32 %v4308_v32, %v3331_v33  ;;  %v2886_v32 = vor.u32 %v4196_v22, %v2883_v23  ;;  %v4292_v33 = vld [vmem:[#allocation4 + $0x34c] sm:$0xf]  ;;  %v3893_v22 = vld [vmem:[#allocation7 + $0x70] sm:$0xf] }
  0xd5   :  { %1971 = vmatpush.bf16.msrb.mxu1 %v3762_v52  ;;  %v2934_v52 = vor.u32 %v4208_v38, %v2931_v39  ;;  %v3142_v38 = vor.u32 %v4260_v27, %v3139_v28  ;;  %v4192_v39 = vld [vmem:[#allocation4 + $0x2c] sm:$0xf] }
  0xd6   :  { %1932 = vmatpush.bf16.msrb.mxu2 %v3378_v58  ;;  %v2915_v58 = vld [vmem:[#allocation4 + $0x98] sm:$0xf0]  ;;  %v4450_v23 = vld [vmem:[#allocation7 + $0x74] sm:$0xf0] }
  0xd7   :  { %1945 = vmatpush.bf16.msrb.mxu3 %v3506_v50  ;;  %v1716_v50 = vpop.f32.mrf.mxu3  ;;  %v2918_v1 = vor.u32 %v4204_v57, %v2915_v58  ;;  %v4288_v57 = vld [vmem:[#allocation4 + $0x32c] sm:$0xf]  ;;  %v3251_v58 = vld [vmem:[#allocation4 + $0x338] sm:$0xf0] }
  0xd8   :  { %1958 = vmatpush.bf16.msrb.mxu0 %v3634_v3  ;;  %v4300_v3 = vld [vmem:[#allocation4 + $0x38c] sm:$0xf] }
  0xd9   :  { %1972 = vmatpush.bf16.msrb.mxu1 %v3746_v9  ;;  %v2899_v9 = vld [vmem:[#allocation4 + $0x78] sm:$0xf0]  ;;  %v3302_v15 = vor.u32 %v4300_v3, %v3299_v4  ;;  %v4344_v4 = vld [vmem:[#allocation4 + $0x4ec] sm:$0xf] }
  0xda   :  { %1933 = vmatpush.bf16.msrb.mxu2 %v3362_v13  ;;  %v4264_v13 = vld [vmem:[#allocation4 + $0x26c] sm:$0xf]  ;;  %v3107_v3 = vld [vmem:[#allocation4 + $0x218] sm:$0xf0] }
  0xdb   :  { %1946 = vmatpush.bf16.msrb.mxu3 %v3490_v6  ;;  %v4200_v6 = vld [vmem:[#allocation4 + $0x6c] sm:$0xf] }
  0xdc   :  { %1959 = vmatpush.bf16.msrb.mxu0 %v3618_v25  ;;  %3833 = vmatmul.msk.bf16.vlgmr.msrb.gmra.mxu1 %vm1649_vm1, %v4789_v41  ;;  %v2902_v16 = vor.u32 %v4200_v6, %v2899_v9  ;;  %v4830_v25 = vpop.f32.mrf.mxu0  ;;  %v3254_v6 = vor.u32 %v4288_v57, %v3251_v58  ;;  %v4376_v9 = vld [vmem:[#allocation4 + $0x5ec] sm:$0xf]  ;;  %v3571_v57 = vld [vmem:[#allocation4 + $0x5b8] sm:$0xf0] }
  0xdd   :  { %1978 = vmatpush.bf16.msra.mxu1 %v2966_v14  ;;  %1934 = vmatmul.bf16.vlgmr.msrb.gmra.mxu2 %v4787_v37  ;;  %v3155_v14 = vld [vmem:[#allocation4 + $0x278] sm:$0xf0]  ;;  %v4832_v29 = vpop.f32.mrf.mxu1  ;;  %v4340_v27 = vld [vmem:[#allocation4 + $0x4cc] sm:$0xf] }
  0xde   :  { %1991 = vmatpush.bf16.msra.mxu2 %v3094_v18  ;;  %1947 = vmatmul.bf16.vlgmr.msrb.gmra.mxu3 %v4791_v42  ;;  %v3283_v18 = vld [vmem:[#allocation4 + $0x378] sm:$0xf0]  ;;  %v3158_v21 = vor.u32 %v4264_v13, %v3155_v14  ;;  %v4400_v58 = vld [vmem:[#allocation4 + $0x6ac] sm:$0xf] }
  0xdf   :  { %2004 = vmatpush.bf16.msra.mxu3 %v3222_v20  ;;  %1960 = vmatmul.bf16.vlgmr.msrb.gmra.mxu0 %v4785_v36  ;;  %v3030_v20 = vor.u32 %v4232_v10, %v3027_v11  ;;  %v3603_v10 = vld [vmem:[#allocation4 + $0x5f8] sm:$0xf0]  ;;  %v4408_v11 = vld [vmem:[#allocation4 + $0x6ec] sm:$0xf] }
  0xe0   :  { %2017 = vmatpush.bf16.msra.mxu0 %v3350_v30  ;;  %v3286_v30 = vor.u32 %v4296_v17, %v3283_v18  ;;  %v3235_v17 = vld [vmem:[#allocation4 + $0x318] sm:$0xf0] }
  0xe1   :  { %1979 = vmatpush.bf16.msra.mxu1 %v2950_v31  ;;  %v4834_v31 = vld [vmem:[#allocation6] sm:$0xf]  ;;  %v4839_v60 = vpop.f32.mrf.mxu3 }
  0xe2   :  { %1992 = vmatpush.bf16.msra.mxu2 %v3078_v34  ;;  %v3267_v34 = vld [vmem:[#allocation4 + $0x358] sm:$0xf0]  ;;  %v391_v50 = vperm.slane %v4834_v31, 0 }
  0xe3   :  { %2005 = vmatpush.bf16.msra.mxu3 %v3206_v35  ;;  %v3014_v35 = vor.u32 %v4228_v24, %v3011_v26  ;;  %v3606_v26 = vor.u32 %v4376_v9, %v3603_v10  ;;  %v3555_v9 = vld [vmem:[#allocation4 + $0x598] sm:$0xf0] }
  0xe4   :  { %2018 = vmatpush.bf16.msra.mxu0 %v3334_v48  ;;  %v3123_v48 = vld [vmem:[#allocation4 + $0x238] sm:$0xf0]  ;;  %v4837_v54 = vpop.f32.mrf.mxu2  ;;  %v1676_v18 = vadd.f32 %v4817_v44, %v391_v50 }
  0xe5   :  { %1980 = vmatpush.bf16.msra.mxu1 %v2934_v52  ;;  %v3270_v52 = vor.u32 %v4292_v33, %v3267_v34  ;;  %v3126_v62 = vor.u32 %v4256_v46, %v3123_v48  ;;  %v1742_v13 = vpop.f32.mrf.mxu1  ;;  %v4372_v33 = vld [vmem:[#allocation4 + $0x5cc] sm:$0xf]  ;;  %v3587_v34 = vld [vmem:[#allocation4 + $0x5d8] sm:$0xf0] }
  0xe6   :  { %1993 = vmatpush.bf16.msra.mxu2 %v3062_v55  ;;  %v2870_v55 = vor.u32 %v4192_v39, %v2867_v40  ;;  %v3894_v39 = vor.u32 %v4450_v23, %v3893_v22  ;;  %v1689_v40 = vadd.f32 %v4819_v47, %v1676_v18  ;;  %v3590_v50 = vor.u32 %v4372_v33, %v3587_v34  ;;  %v4360_v18 = vld [vmem:[#allocation4 + $0x56c] sm:$0xf]  ;;  %v3523_v34 = vld [vmem:[#allocation4 + $0x558] sm:$0xf0] }
  0xe7   :  { %2006 = vmatpush.bf16.msra.mxu3 %v3190_v56  ;;  %v2851_v56 = vld [vmem:[#allocation4 + $0x18] sm:$0xf0]  ;;  %v3886_v47 = vor.u32 %v4448_v45, %v3885_v43  ;;  %v4356_v33 = vld [vmem:[#allocation4 + $0x54c] sm:$0xf] }
  0xe8   :  { %2019 = vmatpush.bf16.msra.mxu0 %v3318_v0  ;;  %v2979_v0 = vld [vmem:[#allocation4 + $0x118] sm:$0xf0]  ;;  %v2854_v14 = vor.u32 %v4188_v53, %v2851_v56  ;;  %v4368_v56 = vld [vmem:[#allocation4 + $0x5ac] sm:$0xf] }
  0xe9   :  { %1981 = vmatpush.bf16.msra.mxu1 %v2918_v1  ;;  %v4252_v1 = vld [vmem:[#allocation4 + $0x20c] sm:$0xf]  ;;  %v1768_v46 = vpop.f32.mrf.mxu3  ;;  %v4440_v43 = vld [vmem:[#allocation7 + $0x24] sm:$0xf0] }
  0xea   :  { %1994 = vmatpush.bf16.msra.mxu2 %v3046_v19  ;;  %v3475_v19 = vld [vmem:[#allocation4 + $0x4f8] sm:$0xf0] }
  0xeb   :  { %2007 = vmatpush.bf16.msra.mxu3 %v3174_v5  ;;  %v1729_v5 = vpop.f32.mrf.mxu0  ;;  %v3478_v24 = vor.u32 %v4344_v4, %v3475_v19  ;;  %v4332_v4 = vld [vmem:[#allocation4 + $0x48c] sm:$0xf] }
  0xec   :  { %2020 = vmatpush.bf16.msra.mxu0 %v3302_v15  ;;  %v3731_v15 = vld [vmem:[#allocation4 + $0x6f8] sm:$0xf0]  ;;  %v1755_v44 = vpop.f32.mrf.mxu2 }
  0xed   :  { %1982 = vmatpush.bf16.msra.mxu1 %v2902_v16  ;;  %v4284_v16 = vld [vmem:[#allocation4 + $0x30c] sm:$0xf]  ;;  %v3734_v28 = vor.u32 %v4408_v11, %v3731_v15  ;;  %v3427_v5 = vld [vmem:[#allocation4 + $0x498] sm:$0xf0]  ;;  %v3869_v11 = vld [vmem:[#allocation7 + $0x40] sm:$0xf] }
  0xee   :  { %1995 = vmatpush.bf16.msra.mxu2 %v3030_v20  ;;  %v2982_v20 = vor.u32 %v4220_v63, %v2979_v0  ;;  %v3877_v63 = vld [vmem:[#allocation7 + $0x50] sm:$0xf]  ;;  %v4446_v0 = vld [vmem:[#allocation7 + $0x54] sm:$0xf0]  ;;  %v3430_v13 = vor.u32 %v4332_v4, %v3427_v5 }
  0xef   :  { %2008 = vmatpush.bf16.msra.mxu3 %v3158_v21  ;;  %v3110_v21 = vor.u32 %v4252_v1, %v3107_v3  ;;  %v3574_v3 = vor.u32 %v4368_v56, %v3571_v57  ;;  %v3878_v10 = vor.u32 %v4446_v0, %v3877_v63  ;;  %v4328_v15 = vld [vmem:[#allocation4 + $0x46c] sm:$0xf]  ;;  %v3507_v56 = vld [vmem:[#allocation4 + $0x538] sm:$0xf0]  ;;  %v1148_v63 = vunpack.c.h.b16 %v4809_v59 }
  0xf0   :  { %2021 = vmatpush.bf16.msra.mxu0 %v3286_v30  ;;  %v3238_v30 = vor.u32 %v4284_v16, %v3235_v17  ;;  %v3411_v17 = vld [vmem:[#allocation4 + $0x478] sm:$0xf0]  ;;  %v4384_v57 = vld [vmem:[#allocation4 + $0x62c] sm:$0xf] }
  0xf1   :  { %1983 = vmatpush.bf16.msra.mxu1 %v2886_v32  ;;  %v3459_v32 = vld [vmem:[#allocation4 + $0x4d8] sm:$0xf0]  ;;  %v4316_v4 = vld [vmem:[#allocation4 + $0x40c] sm:$0xf] }
  0xf2   :  { %1996 = vmatpush.bf16.msra.mxu2 %v3014_v35  ;;  %v4404_v35 = vld [vmem:[#allocation4 + $0x6cc] sm:$0xf]  ;;  %v3462_v48 = vor.u32 %v4340_v27, %v3459_v32  ;;  %v3395_v32 = vld [vmem:[#allocation4 + $0x458] sm:$0xf0] }
  0xf3   :  { %2009 = vmatpush.bf16.msra.mxu3 %v3142_v38  ;;  %v3715_v38 = vld [vmem:[#allocation4 + $0x6d8] sm:$0xf0] }
  0xf4   :  { %2022 = vmatpush.bf16.msra.mxu0 %v3270_v52  ;;  %v4336_v52 = vld [vmem:[#allocation4 + $0x4ac] sm:$0xf]  ;;  %v3718_v53 = vor.u32 %v4404_v35, %v3715_v38  ;;  %v3651_v38 = vld [vmem:[#allocation4 + $0x658] sm:$0xf0] }
  0xf5   :  { %1984 = vmatpush.bf16.msra.mxu1 %v2870_v55  ;;  %v3443_v55 = vld [vmem:[#allocation4 + $0x4b8] sm:$0xf0]  ;;  %v4388_v35 = vld [vmem:[#allocation4 + $0x64c] sm:$0xf] }
  0xf6   :  { %1997 = vmatpush.bf16.msra.mxu2 %v2998_v61  ;;  %v3699_v61 = vld [vmem:[#allocation4 + $0x6b8] sm:$0xf0]  ;;  %v3446_v1 = vor.u32 %v4336_v52, %v3443_v55  ;;  %v3654_v52 = vor.u32 %v4388_v35, %v3651_v38  ;;  %v4352_v55 = vld [vmem:[#allocation4 + $0x52c] sm:$0xf]  ;;  %v3887_v35 = vld [vmem:[#allocation7 + $0x68] sm:$0xf0] }
  0xf7   :  { %2010 = vmatpush.bf16.msra.mxu3 %v3126_v62  ;;  %v1702_v62 = vadd.f32 %v4821_v49, %v1689_v40  ;;  %v3702_v19 = vor.u32 %v4400_v58, %v3699_v61  ;;  %v3683_v49 = vld [vmem:[#allocation4 + $0x698] sm:$0xf0]  ;;  %v3853_v40 = vld [vmem:[#allocation7 + $0x20] sm:$0xf] }
  0xf8   :  { %2023 = vmatpush.bf16.msra.mxu0 %v3254_v6  ;;  %v4364_v6 = vld [vmem:[#allocation4 + $0x58c] sm:$0xf]  ;;  %v3635_v58 = vld [vmem:[#allocation4 + $0x638] sm:$0xf0]  ;;  %v3854_v61 = vor.u32 %v4440_v43, %v3853_v40  ;;  %v3941_v43 = vld [vmem:[#allocation7 + $0xd0] sm:$0xf] }
  0xf9   :  { %1985 = vmatpush.bf16.msra.mxu1 %v2854_v14  ;;  %v3558_v14 = vor.u32 %v4364_v6, %v3555_v9  ;;  %v3638_v6 = vor.u32 %v4384_v57, %v3635_v58  ;;  %v4348_v9 = vld [vmem:[#allocation4 + $0x50c] sm:$0xf] }
  0xfa   :  { %1998 = vmatpush.bf16.msra.mxu2 %v2982_v20  ;;  %v3539_v20 = vld [vmem:[#allocation4 + $0x578] sm:$0xf0] }
  0xfb   :  { %2011 = vmatpush.bf16.msra.mxu3 %v3110_v21  ;;  %v3667_v21 = vld [vmem:[#allocation4 + $0x678] sm:$0xf0]  ;;  %v3542_v27 = vor.u32 %v4360_v18, %v3539_v20  ;;  %v4449_v20 = vld [vmem:[#allocation7 + $0x74] sm:$0xf] }
  0xfc   :  { %2024 = vmatpush.bf16.msra.mxu0 %v3238_v30  ;;  %1986 = vmatmul.bf16.vlgmr.msra.gmra.mxu1 %v4776_v2  ;;  %v4444_v2 = vld [vmem:[#allocation7 + $0x44] sm:$0xf0]  ;;  %v4850_v44 = vpop.f32.mrf.mxu0 }
  0xfd   :  { %2030 = vmatpush.bf16.msrb.mxu1 %v3478_v24  ;;  %1999 = vmatmul.bf16.vlgmr.msra.gmra.mxu2 %v4780_v8  ;;  %v4396_v8 = vld [vmem:[#allocation4 + $0x68c] sm:$0xf]  ;;  %v3870_v22 = vor.u32 %v4444_v2, %v3869_v11  ;;  %v3861_v24 = vld [vmem:[#allocation7 + $0x30] sm:$0xf]  ;;  %v4853_v45 = vpop.f32.mrf.mxu1 }
  0xfe   :  { %2043 = vmatpush.bf16.msrb.mxu2 %v3606_v26  ;;  %2012 = vmatmul.bf16.vlgmr.msra.gmra.mxu3 %v4772_v51  ;;  %v1715_v51 = vadd.f32 %v4823_v12, %v1702_v62  ;;  %v3686_v16 = vor.u32 %v4396_v8, %v3683_v49  ;;  %v4442_v12 = vld [vmem:[#allocation7 + $0x34] sm:$0xf0]  ;;  %v3414_v26 = vor.u32 %v4328_v15, %v3411_v17  ;;  %v3491_v8 = vld [vmem:[#allocation4 + $0x518] sm:$0xf0] }
  0xff   :  { %2056 = vmatpush.bf16.msrb.mxu3 %v3734_v28  ;;  %2025 = vmatmul.bf16.vlgmr.msra.gmra.mxu0 %v4778_v7  ;;  %v4392_v7 = vld [vmem:[#allocation4 + $0x66c] sm:$0xf]  ;;  %v4436_v15 = vld [vmem:[#allocation7 + $0x4] sm:$0xf0]  ;;  %v3494_v18 = vor.u32 %v4348_v9, %v3491_v8 }
 0x100   :  { %2480 = vmatpush.bf16.msrb.mxu0 %v3894_v39  ;;  %v1728_v23 = vadd.f32 %v4830_v25, %v1715_v51  ;;  %v4324_v28 = vld [vmem:[#allocation4 + $0x44c] sm:$0xf]  ;;  %v3670_v30 = vor.u32 %v4392_v7, %v3667_v21  ;;  %v3862_v39 = vor.u32 %v4442_v12, %v3861_v24  ;;  %v3957_v51 = vld [vmem:[#allocation7 + $0xf0] sm:$0xf]  ;;  %v3895_v7 = vld [vmem:[#allocation7 + $0x78] sm:$0xf0] }
 0x101   :  { %2031 = vmatpush.bf16.msrb.mxu1 %v3462_v48  ;;  %v3398_v46 = vor.u32 %v4324_v28, %v3395_v32  ;;  %v3526_v48 = vor.u32 %v4356_v33, %v3523_v34  ;;  %v4438_v62 = vld [vmem:[#allocation7 + $0x14] sm:$0xf0]  ;;  %v1779_v0 = vpop.f32.mrf.mxu3  ;;  %v3949_v12 = vld [vmem:[#allocation7 + $0xe0] sm:$0xf]  ;;  %v3898_v32 = vor.u32 %v4449_v20, %v3895_v7  ;;  %v4447_v34 = vld [vmem:[#allocation7 + $0x64] sm:$0xf] }
 0x102   :  { %2044 = vmatpush.bf16.msrb.mxu2 %v3590_v50  ;;  %v1741_v25 = vadd.f32 %v4832_v29, %v1728_v23  ;;  %v4320_v50 = vld [vmem:[#allocation4 + $0x42c] sm:$0xf]  ;;  %v392_v23 = vperm.slane %v4834_v31, 1  ;;  %v3779_v8 = vld [vmem:[#allocation4 + $0x758] sm:$0xf0] }
 0x103   :  { %2057 = vmatpush.bf16.msrb.mxu3 %v3718_v53  ;;  %v3379_v53 = vld [vmem:[#allocation4 + $0x438] sm:$0xf0]  ;;  %v4380_v49 = vld [vmem:[#allocation4 + $0x60c] sm:$0xf] }
 0x104   :  { %2481 = vmatpush.bf16.msrb.mxu0 %v3886_v47  ;;  %v1754_v29 = vadd.f32 %v4837_v54, %v1741_v25  ;;  %v3845_v47 = vld [vmem:[#allocation7 + $0x10] sm:$0xf]  ;;  %v4857_v5 = vpop.f32.mrf.mxu2  ;;  %v3619_v54 = vld [vmem:[#allocation4 + $0x618] sm:$0xf0]  ;;  %v4466_v11 = vld [vmem:[#allocation7 + $0xf4] sm:$0xf0]  ;;  %v1794_v59 = vpop.f32.mrf.mxu0  ;;  %v1780_v25 = vadd.f32 %v1779_v0, %v392_v23 }
 0x105   :  { %2032 = vmatpush.bf16.msrb.mxu1 %v3446_v1  ;;  %v3382_v1 = vor.u32 %v4320_v50, %v3379_v53  ;;  %v3622_v21 = vor.u32 %v4380_v49, %v3619_v54  ;;  %v4432_v28 = vld [vmem:[#allocation4 + $0x7ac] sm:$0xf]  ;;  %v3890_v53 = vor.u32 %v4447_v34, %v3887_v35  ;;  %v4443_v0 = vld [vmem:[#allocation7 + $0x44] sm:$0xf]  ;;  %v3917_v59 = vld [vmem:[#allocation7 + $0xa0] sm:$0xf] }
 0x106   :  { %2045 = vmatpush.bf16.msrb.mxu2 %v3574_v3  ;;  %v3510_v3 = vor.u32 %v4352_v55, %v3507_v56  ;;  %v1767_v2 = vadd.f32 %v4839_v60, %v1754_v29  ;;  %v4428_v50 = vld [vmem:[#allocation4 + $0x78c] sm:$0xf]  ;;  %v4445_v55 = vld [vmem:[#allocation7 + $0x54] sm:$0xf]  ;;  %v3879_v56 = vld [vmem:[#allocation7 + $0x58] sm:$0xf0]  ;;  %v1793_v58 = vadd.f32 %v4850_v44, %v1780_v25 }
 0x107   :  { %2058 = vmatpush.bf16.msrb.mxu3 %v3702_v19  ;;  %v3363_v19 = vld [vmem:[#allocation4 + $0x418] sm:$0xf0]  ;;  %v3933_v29 = vld [vmem:[#allocation7 + $0xc0] sm:$0xf]  ;;  %v4482_v44 = vld [vmem:[#allocation7 + $0x174] sm:$0xf0] }
 0x108   :  { %2482 = vmatpush.bf16.msrb.mxu0 %v3878_v10  ;;  %v3846_v10 = vor.u32 %v4438_v62, %v3845_v47  ;;  %v3366_v17 = vor.u32 %v4316_v4, %v3363_v19  ;;  %v2082_v60 = vmax.f32 %v1767_v2, 0.0  ;;  %v4424_v47 = vld [vmem:[#allocation4 + $0x76c] sm:$0xf]  ;;  %v3795_v62 = vld [vmem:[#allocation4 + $0x778] sm:$0xf0] }
 0x109   :  { %2033 = vmatpush.bf16.msrb.mxu1 %v3430_v13  ;;  %v1400_v13 = vpack.c.b16 %v1148_v63, %v1148_v63  ;;  %v1781_v33 = vpop.f32.mrf.mxu3  ;;  %v3882_v63 = vor.u32 %v4445_v55, %v3879_v56  ;;  %v3798_v4 = vor.u32 %v4424_v47, %v3795_v62  ;;  %v4458_v19 = vld [vmem:[#allocation7 + $0xb4] sm:$0xf0]  ;;  %v3855_v23 = vld [vmem:[#allocation7 + $0x28] sm:$0xf0]  ;;  %v3847_v25 = vld [vmem:[#allocation7 + $0x18] sm:$0xf0] }
 0x10a   :  { %2046 = vmatpush.bf16.msrb.mxu2 %v3558_v14  ;;  %v3837_v14 = vld [vmem:[#allocation7] sm:$0xf]  ;;  %v4420_v9 = vld [vmem:[#allocation4 + $0x74c] sm:$0xf]  ;;  %v3747_v33 = vld [vmem:[#allocation4 + $0x718] sm:$0xf0] }
 0x10b   :  { %2059 = vmatpush.bf16.msrb.mxu3 %v3686_v16  ;;  %v1807_v16 = vpop.f32.mrf.mxu1  ;;  %v3838_v24 = vor.u32 %v4436_v15, %v3837_v14  ;;  %v4456_v14 = vld [vmem:[#allocation7 + $0xa4] sm:$0xf0]  ;;  %v4013_v15 = vld [vmem:[#allocation7 + $0x160] sm:$0xf] }
 0x10c   :  { %2483 = vmatpush.bf16.msrb.mxu0 %v3870_v22  ;;  %v3958_v22 = vor.u32 %v4466_v11, %v3957_v51  ;;  %v1820_v38 = vpop.f32.mrf.mxu2  ;;  %v3863_v51 = vld [vmem:[#allocation7 + $0x38] sm:$0xf0]  ;;  %v4480_v16 = vld [vmem:[#allocation7 + $0x164] sm:$0xf0]  ;;  %v3997_v56 = vld [vmem:[#allocation7 + $0x140] sm:$0xf] }
 0x10d   :  { %2034 = vmatpush.bf16.msrb.mxu1 %v3414_v26  ;;  %v4464_v26 = vld [vmem:[#allocation7 + $0xe4] sm:$0xf0] }
 0x10e   :  { %2047 = vmatpush.bf16.msrb.mxu2 %v3542_v27  ;;  %v1664_v27 = vsel %vm1653_vm0, %v1400_v13, 0 }
 0x10f   :  { %2060 = vmatpush.bf16.msrb.mxu3 %v3670_v30  ;;  %v3827_v30 = vld [vmem:[#allocation4 + $0x7b8] sm:$0xf0] }
 0x110   :  { %2484 = vmatpush.bf16.msrb.mxu0 %v3862_v39  ;;  %v3950_v39 = vor.u32 %v4464_v26, %v3949_v12  ;;  %v3830_v40 = vor.u32 %v4432_v28, %v3827_v30  ;;  %v3918_v12 = vor.u32 %v4456_v14, %v3917_v59  ;;  %v3909_v26 = vld [vmem:[#allocation7 + $0x90] sm:$0xf]  ;;  %v4478_v30 = vld [vmem:[#allocation7 + $0x154] sm:$0xf0]  ;;  %v4461_v59 = vld [vmem:[#allocation7 + $0xd4] sm:$0xf] }
 0x111   :  { %2035 = vmatpush.bf16.msrb.mxu1 %v3398_v46  ;;  %v4462_v46 = vld [vmem:[#allocation7 + $0xd4] sm:$0xf0]  ;;  %v4005_v28 = vld [vmem:[#allocation7 + $0x150] sm:$0xf] }
 0x112   :  { %2048 = vmatpush.bf16.msrb.mxu2 %v3526_v48  ;;  %v4862_v48 = vpack.c.bf16 %v2082_v60, %v2082_v60  ;;  %v3942_v57 = vor.u32 %v4462_v46, %v3941_v43  ;;  %v4006_v35 = vor.u32 %v4478_v30, %v4005_v28  ;;  %v3901_v46 = vld [vmem:[#allocation7 + $0x80] sm:$0xf]  ;;  %v4470_v14 = vld [vmem:[#allocation7 + $0x114] sm:$0xf0]  ;;  %v4479_v30 = vld [vmem:[#allocation7 + $0x164] sm:$0xf] }
 0x113   :  { %2061 = vmatpush.bf16.msrb.mxu3 %v3654_v52  ;;  %v3811_v52 = vld [vmem:[#allocation4 + $0x798] sm:$0xf0] }
 0x114   :  { %2485 = vmatpush.bf16.msrb.mxu0 %v3854_v61  ;;  %v3814_v61 = vor.u32 %v4428_v50, %v3811_v52 }
 0x115   :  { %2036 = vmatpush.bf16.msrb.mxu1 %v3382_v1  ;;  %v3925_v1 = vld [vmem:[#allocation7 + $0xb0] sm:$0xf] }
 0x116   :  { %2049 = vmatpush.bf16.msrb.mxu2 %v3510_v3  ;;  %v1806_v3 = vadd.f32 %v4853_v45, %v1793_v58  ;;  %v3926_v11 = vor.u32 %v4458_v19, %v3925_v1  ;;  %v3782_v45 = vor.u32 %v4420_v9, %v3779_v8  ;;  %v4474_v19 = vld [vmem:[#allocation7 + $0x134] sm:$0xf0]  ;;  %v3951_v9 = vld [vmem:[#allocation7 + $0xe8] sm:$0xf0] }
 0x117   :  { %2062 = vmatpush.bf16.msrb.mxu3 %v3638_v6  ;;  %v4021_v6 = vld [vmem:[#allocation7 + $0x170] sm:$0xf] }
 0x118   :  { %2486 = vmatpush.bf16.msrb.mxu0 %v3846_v10  ;;  %v4022_v54 = vor.u32 %v4482_v44, %v4021_v6  ;;  %v4441_v10 = vld [vmem:[#allocation7 + $0x34] sm:$0xf]  ;;  %v1819_v2 = vadd.f32 %v4857_v5, %v1806_v3  ;;  %v4463_v44 = vld [vmem:[#allocation7 + $0xe4] sm:$0xf] }
 0x119   :  { %2037 = vmatpush.bf16.msrb.mxu1 %v3366_v17  ;;  %v4416_v17 = vld [vmem:[#allocation4 + $0x72c] sm:$0xf]  ;;  %v3866_v20 = vor.u32 %v4441_v10, %v3863_v51  ;;  %v3981_v10 = vld [vmem:[#allocation7 + $0x120] sm:$0xf]  ;;  %v4472_v51 = vld [vmem:[#allocation7 + $0x124] sm:$0xf0] }
 0x11a   :  { %2050 = vmatpush.bf16.msrb.mxu2 %v3494_v18  ;;  %v3763_v18 = vld [vmem:[#allocation4 + $0x738] sm:$0xf0] }
 0x11b   :  { %2063 = vmatpush.bf16.msrb.mxu3 %v3622_v21  ;;  %v4014_v21 = vor.u32 %v4480_v16, %v4013_v15  ;;  %v3766_v60 = vor.u32 %v4416_v17, %v3763_v18  ;;  %v3935_v16 = vld [vmem:[#allocation7 + $0xc8] sm:$0xf0]  ;;  %v3965_v18 = vld [vmem:[#allocation7 + $0x100] sm:$0xf] }
 0x11c   :  { %2487 = vmatpush.bf16.msrb.mxu0 %v3838_v24  ;;  %2038 = vmatmul.bf16.vlgmr.msrb.gmra.mxu1 %v4787_v37  ;;  %v1844_v13 = vpop.f32.mrf.mxu0 }
 0x11d   :  { %2493 = vmatpush.bf16.msra.mxu1 %v3958_v22  ;;  %2051 = vmatmul.bf16.vlgmr.msrb.gmra.mxu2 %v4791_v42  ;;  %v4460_v42 = vld [vmem:[#allocation7 + $0xc4] sm:$0xf0]  ;;  %v1857_v7 = vpop.f32.mrf.mxu1  ;;  %v4439_v22 = vld [vmem:[#allocation7 + $0x24] sm:$0xf] }
 0x11e   :  { %2064 = vmatmul.bf16.vlgmr.msrb.gmra.mxu3 %v4785_v36  ;;  %v3871_v36 = vld [vmem:[#allocation7 + $0x48] sm:$0xf0]  ;;  %v3934_v37 = vor.u32 %v4460_v42, %v3933_v29  ;;  %2506 = vmatpush.bf16.msra.mxu2 %v4022_v54  ;;  %v3858_v34 = vor.u32 %v4439_v22, %v3855_v23  ;;  %v3959_v29 = vld [vmem:[#allocation7 + $0xf8] sm:$0xf0]  ;;  %v4457_v23 = vld [vmem:[#allocation7 + $0xb4] sm:$0xf] }
 0x11f   :  { %2070 = vmatpush.bf16.msra.mxu3 %v1664_v27  ;;  %2488 = vmatmul.bf16.vlgmr.msrb.gmra.mxu0 %v4862_v48  ;;  %v3874_v49 = vor.u32 %v4443_v0, %v3871_v36  ;;  %v4454_v27 = vld [vmem:[#allocation7 + $0x94] sm:$0xf0]  ;;  %v3839_v0 = vld [vmem:[#allocation7 + $0x8] sm:$0xf0] }
 0x120   :  { %2532 = vmatpush.bf16.msra.mxu0 %v3898_v32  ;;  %v4412_v32 = vld [vmem:[#allocation4 + $0x70c] sm:$0xf]  ;;  %v3910_v43 = vor.u32 %v4454_v27, %v3909_v26 }
 0x121   :  { %2494 = vmatpush.bf16.msra.mxu1 %v3950_v39  ;;  %v1831_v24 = vpop.f32.mrf.mxu3  ;;  %v4437_v39 = vld [vmem:[#allocation7 + $0x14] sm:$0xf]  ;;  %v3750_v52 = vor.u32 %v4412_v32, %v3747_v33  ;;  %v4015_v32 = vld [vmem:[#allocation7 + $0x168] sm:$0xf0] }
 0x122   :  { %2507 = vmatpush.bf16.msra.mxu2 %v4014_v21  ;;  %v1832_v5 = vadd.f32 %v1831_v24, %v1819_v2  ;;  %v3850_v58 = vor.u32 %v4437_v39, %v3847_v25  ;;  %v3943_v2 = vld [vmem:[#allocation7 + $0xd8] sm:$0xf0]  ;;  %v4018_v33 = vor.u32 %v4479_v30, %v4015_v32  ;;  %v4477_v25 = vld [vmem:[#allocation7 + $0x154] sm:$0xf]  ;;  %v4061_v30 = vld [vmem:[#allocation7 + $0x1c0] sm:$0xf] }
 0x123   :  { %2071 = vmatpush.bf16.msra.mxu3 %v3830_v40  ;;  %v1870_v40 = vpop.f32.mrf.mxu2  ;;  %v3946_v15 = vor.u32 %v4461_v59, %v3943_v2  ;;  %v4023_v21 = vld [vmem:[#allocation7 + $0x178] sm:$0xf0]  ;;  %v4492_v32 = vld [vmem:[#allocation7 + $0x1c4] sm:$0xf0] }
 0x124   :  { %2533 = vmatpush.bf16.msra.mxu0 %v3890_v53  ;;  %v1845_v38 = vadd.f32 %v1844_v13, %v1832_v5  ;;  %v4452_v53 = vld [vmem:[#allocation7 + $0x84] sm:$0xf0]  ;;  %v1846_v55 = vpop.f32.mrf.mxu0  ;;  %v3973_v13 = vld [vmem:[#allocation7 + $0x110] sm:$0xf]  ;;  %v3927_v24 = vld [vmem:[#allocation7 + $0xb8] sm:$0xf0] }
 0x125   :  { %2495 = vmatpush.bf16.msra.mxu1 %v3942_v57  ;;  %v4476_v57 = vld [vmem:[#allocation7 + $0x144] sm:$0xf0]  ;;  %v1859_v47 = vpop.f32.mrf.mxu1  ;;  %v3902_v36 = vor.u32 %v4452_v53, %v3901_v46  ;;  %v3974_v17 = vor.u32 %v4470_v14, %v3973_v13  ;;  %v3930_v5 = vor.u32 %v4457_v23, %v3927_v24  ;;  %v3911_v39 = vld [vmem:[#allocation7 + $0x98] sm:$0xf0]  ;;  %v3903_v53 = vld [vmem:[#allocation7 + $0x88] sm:$0xf0] }
 0x126   :  { %2508 = vmatpush.bf16.msra.mxu2 %v4006_v35  ;;  %v1858_v50 = vadd.f32 %v1857_v7, %v1845_v38  ;;  %v3998_v42 = vor.u32 %v4476_v57, %v3997_v56  ;;  %v4481_v7 = vld [vmem:[#allocation7 + $0x174] sm:$0xf]  ;;  %v4475_v57 = vld [vmem:[#allocation7 + $0x144] sm:$0xf]  ;;  %v4085_v14 = vld [vmem:[#allocation7 + $0x1f0] sm:$0xf] }
 0x127   :  { %2072 = vmatpush.bf16.msra.mxu3 %v3814_v61  ;;  %v4465_v61 = vld [vmem:[#allocation7 + $0xf4] sm:$0xf]  ;;  %v4026_v26 = vor.u32 %v4481_v7, %v4023_v21  ;;  %v4077_v7 = vld [vmem:[#allocation7 + $0x1e0] sm:$0xf]  ;;  %v4496_v21 = vld [vmem:[#allocation7 + $0x1e4] sm:$0xf0] }
 0x128   :  { %2534 = vmatpush.bf16.msra.mxu0 %v3882_v63  ;;  %v1871_v62 = vadd.f32 %v1870_v40, %v1858_v50  ;;  %v4435_v63 = vld [vmem:[#allocation7 + $0x4] sm:$0xf]  ;;  %v3962_v3 = vor.u32 %v4465_v61, %v3959_v29  ;;  %v4453_v38 = vld [vmem:[#allocation7 + $0x94] sm:$0xf]  ;;  %v4007_v40 = vld [vmem:[#allocation7 + $0x158] sm:$0xf0] }
 0x129   :  { %2496 = vmatpush.bf16.msra.mxu1 %v3934_v37  ;;  %v1833_v37 = vpop.f32.mrf.mxu3  ;;  %v3842_v6 = vor.u32 %v4435_v63, %v3839_v0  ;;  %v3914_v46 = vor.u32 %v4453_v38, %v3911_v39  ;;  %v4473_v47 = vld [vmem:[#allocation7 + $0x134] sm:$0xf]  ;;  %v393_v63 = vperm.slane %v4834_v31, 2  ;;  %v4069_v23 = vld [vmem:[#allocation7 + $0x1d0] sm:$0xf] }
 0x12a   :  { %2509 = vmatpush.bf16.msra.mxu2 %v3998_v42  ;;  %v2083_v1 = vmax.f32 %v1871_v62, 0.0  ;;  %v3991_v62 = vld [vmem:[#allocation7 + $0x138] sm:$0xf0]  ;;  %v3983_v37 = vld [vmem:[#allocation7 + $0x128] sm:$0xf0] }
 0x12b   :  { %2073 = vmatpush.bf16.msra.mxu3 %v3798_v4  ;;  %v3989_v4 = vld [vmem:[#allocation7 + $0x130] sm:$0xf]  ;;  %v1872_v54 = vpop.f32.mrf.mxu2  ;;  %v3994_v0 = vor.u32 %v4473_v47, %v3991_v62  ;;  %v4494_v24 = vld [vmem:[#allocation7 + $0x1d4] sm:$0xf0]  ;;  %v4087_v47 = vld [vmem:[#allocation7 + $0x1f8] sm:$0xf0] }
 0x12c   :  { %2535 = vmatpush.bf16.msra.mxu0 %v3874_v49  ;;  %v3990_v8 = vor.u32 %v4474_v19, %v3989_v4  ;;  %v4871_v49 = vpack.c.bf16 %v2083_v1, %v2083_v1  ;;  %v4469_v19 = vld [vmem:[#allocation7 + $0x114] sm:$0xf]  ;;  %v3967_v54 = vld [vmem:[#allocation7 + $0x108] sm:$0xf0]  ;;  %v4490_v38 = vld [vmem:[#allocation7 + $0x1b4] sm:$0xf0] }
 0x12d   :  { %2497 = vmatpush.bf16.msra.mxu1 %v3926_v11  ;;  %v3954_v11 = vor.u32 %v4463_v44, %v3951_v9 }
 0x12e   :  { %2510 = vmatpush.bf16.msra.mxu2 %v3990_v8  ;;  %v4467_v8 = vld [vmem:[#allocation7 + $0x104] sm:$0xf] }
 0x12f   :  { %2074 = vmatpush.bf16.msra.mxu3 %v3782_v45  ;;  %v3982_v45 = vor.u32 %v4472_v51, %v3981_v10  ;;  %v3970_v10 = vor.u32 %v4467_v8, %v3967_v54 }
 0x130   :  { %2536 = vmatpush.bf16.msra.mxu0 %v3866_v20  ;;  %v4468_v20 = vld [vmem:[#allocation7 + $0x104] sm:$0xf0] }
 0x131   :  { %2498 = vmatpush.bf16.msra.mxu1 %v3918_v12  ;;  %v3966_v12 = vor.u32 %v4468_v20, %v3965_v18 }
 0x132   :  { %2511 = vmatpush.bf16.msra.mxu2 %v3982_v45 }
 0x133   :  { %2075 = vmatpush.bf16.msra.mxu3 %v3766_v60  ;;  %v4455_v60 = vld [vmem:[#allocation7 + $0xa4] sm:$0xf] }
 0x134   :  { %2537 = vmatpush.bf16.msra.mxu0 %v3858_v34 }
 0x135   :  { %2499 = vmatpush.bf16.msra.mxu1 %v3910_v43  ;;  %v4010_v43 = vor.u32 %v4477_v25, %v4007_v40 }
 0x136   :  { %2512 = vmatpush.bf16.msra.mxu2 %v3974_v17 }
 0x137   :  { %2076 = vmatpush.bf16.msra.mxu3 %v3750_v52  ;;  %v4451_v52 = vld [vmem:[#allocation7 + $0x84] sm:$0xf] }
 0x138   :  { %2538 = vmatpush.bf16.msra.mxu0 %v3850_v58  ;;  %v3999_v58 = vld [vmem:[#allocation7 + $0x148] sm:$0xf0]  ;;  %v3906_v29 = vor.u32 %v4451_v52, %v3903_v53 }
 0x139   :  { %2500 = vmatpush.bf16.msra.mxu1 %v3902_v36  ;;  %v4002_v61 = vor.u32 %v4475_v57, %v3999_v58  ;;  %v4471_v36 = vld [vmem:[#allocation7 + $0x124] sm:$0xf]  ;;  %v4029_v58 = vld [vmem:[#allocation7 + $0x180] sm:$0xf] }
 0x13a   :  { %3834 = vmatmul.msk.bf16.vlgmr.msra.gmra.mxu3 %vm1649_vm1, %v4789_v41  ;;  %v4459_v41 = vld [vmem:[#allocation7 + $0xc4] sm:$0xf]  ;;  %2513 = vmatpush.bf16.msra.mxu2 %v3966_v12 }
 0x13b   :  { %v3938_v22 = vor.u32 %v4459_v41, %v3935_v16 }
 0x13c   :  { %2539 = vmatpush.bf16.msra.mxu0 %v3842_v6  ;;  %2501 = vmatmul.bf16.vlgmr.msra.gmra.mxu1 %v4871_v49  ;;  %v1909_v27 = vpop.f32.mrf.mxu0  ;;  %v3975_v6 = vld [vmem:[#allocation7 + $0x118] sm:$0xf0] }
 0x13d   :  { %2545 = vmatpush.bf16.msrb.mxu1 %v3962_v3  ;;  %v1922_v28 = vpop.f32.mrf.mxu1  ;;  %v3986_v3 = vor.u32 %v4471_v36, %v3983_v37  ;;  %v3978_v44 = vor.u32 %v4469_v19, %v3975_v6  ;;  %v4495_v36 = vld [vmem:[#allocation7 + $0x1e4] sm:$0xf]  ;;  %v4079_v37 = vld [vmem:[#allocation7 + $0x1e8] sm:$0xf0] }
 0x13e   :  { %2558 = vmatpush.bf16.msrb.mxu2 %v4026_v26 }
 0x13f   :  { %2540 = vmatmul.bf16.vlgmr.msra.gmra.mxu0 %v4862_v48  ;;  %v3919_v48 = vld [vmem:[#allocation7 + $0xa8] sm:$0xf0] }
 0x140   :  { %v3922_v34 = vor.u32 %v4455_v60, %v3919_v48  ;;  %v1883_v50 = vpop.f32.mrf.mxu2  ;;  %v4070_v60 = vor.u32 %v4494_v24, %v4069_v23 }
 0x141   :  { %2546 = vmatpush.bf16.msrb.mxu1 %v3954_v11  ;;  %v1896_v35 = vpop.f32.mrf.mxu3  ;;  %v1884_v4 = vadd.f32 %v1883_v50, %v393_v63 }
 0x142   :  { %2559 = vmatpush.bf16.msrb.mxu2 %v4018_v33  ;;  %v4062_v33 = vor.u32 %v4492_v32, %v4061_v30 }
 0x143   :  { %v1897_v9 = vadd.f32 %v1896_v35, %v1884_v4  ;;  %v4053_v35 = vld [vmem:[#allocation7 + $0x1b0] sm:$0xf]  ;;  %v4071_v4 = vld [vmem:[#allocation7 + $0x1d8] sm:$0xf0] }
 0x144   :  { %v1911_v55 = vpop.f32.mrf.mxu0  ;;  %v4054_v25 = vor.u32 %v4490_v38, %v4053_v35 }
 0x145   :  { %2547 = vmatpush.bf16.msrb.mxu1 %v3946_v15  ;;  %v1924_v56 = vpop.f32.mrf.mxu1  ;;  %v1910_v51 = vadd.f32 %v1909_v27, %v1897_v9  ;;  %v4498_v15 = vld [vmem:[#allocation7 + $0x1f4] sm:$0xf0]  ;;  %v4037_v55 = vld [vmem:[#allocation7 + $0x190] sm:$0xf]  ;;  %v4063_v9 = vld [vmem:[#allocation7 + $0x1c8] sm:$0xf0] }
 0x146   :  { %2560 = vmatpush.bf16.msrb.mxu2 %v4010_v43  ;;  %v4045_v43 = vld [vmem:[#allocation7 + $0x1a0] sm:$0xf]  ;;  %v4486_v56 = vld [vmem:[#allocation7 + $0x194] sm:$0xf0] }
 0x147   :  { %v1923_v11 = vadd.f32 %v1922_v28, %v1910_v51  ;;  %v4038_v57 = vor.u32 %v4486_v56, %v4037_v55  ;;  %v4489_v51 = vld [vmem:[#allocation7 + $0x1b4] sm:$0xf] }
 0x148   :  { %v1885_v1 = vpop.f32.mrf.mxu2 }
 0x149   :  { %2548 = vmatpush.bf16.msrb.mxu1 %v3938_v22  ;;  %v1898_v42 = vpop.f32.mrf.mxu3  ;;  %v4078_v22 = vor.u32 %v4496_v21, %v4077_v7  ;;  %v4082_v1 = vor.u32 %v4495_v36, %v4079_v37  ;;  %v4483_v21 = vld [vmem:[#allocation7 + $0x184] sm:$0xf]  ;;  %v4501_v37 = vld [vmem:[#allocation9 + $0x10] sm:$0xff] }
 0x14a   :  { %2561 = vmatpush.bf16.msrb.mxu2 %v4002_v61  ;;  %v4484_v61 = vld [vmem:[#allocation7 + $0x184] sm:$0xf0]  ;;  %v4497_v42 = vld [vmem:[#allocation7 + $0x1f4] sm:$0xf] }
 0x14b   :  { %v4030_v63 = vor.u32 %v4484_v61, %v4029_v58  ;;  %v4514_v58 = vld [vmem:[#allocation9 + $0x78] sm:$0xff]  ;;  %v4505_v61 = vld [vmem:[#allocation9 + $0x30] sm:$0xff] }
 0x14d   :  { %2549 = vmatpush.bf16.msrb.mxu1 %v3930_v5 }
 0x14e   :  { %2562 = vmatpush.bf16.msrb.mxu2 %v3994_v0  ;;  %v4090_v0 = vor.u32 %v4497_v42, %v4087_v47  ;;  %v4504_v42 = vld [vmem:[#allocation9 + $0x28] sm:$0xff] }
 0x151   :  { %2550 = vmatpush.bf16.msrb.mxu1 %v3922_v34 }
 0x152   :  { %2563 = vmatpush.bf16.msrb.mxu2 %v3986_v3  ;;  %v4493_v3 = vld [vmem:[#allocation7 + $0x1d4] sm:$0xf] }
 0x153   :  { %v4074_v19 = vor.u32 %v4493_v3, %v4071_v4 }
 0x155   :  { %2551 = vmatpush.bf16.msrb.mxu1 %v3914_v46  ;;  %v4488_v46 = vld [vmem:[#allocation7 + $0x1a4] sm:$0xf0] }
 0x156   :  { %2564 = vmatpush.bf16.msrb.mxu2 %v3978_v44  ;;  %v4046_v50 = vor.u32 %v4488_v46, %v4045_v43  ;;  %v4491_v44 = vld [vmem:[#allocation7 + $0x1c4] sm:$0xf] }
 0x157   :  { %v4066_v54 = vor.u32 %v4491_v44, %v4063_v9  ;;  %v4499_v44 = vld [vmem:[#allocation9] sm:$0xff] }
 0x158   :  { %v4511_v9 = vld [vmem:[#allocation9 + $0x60] sm:$0xff] }
 0x159   :  { %2552 = vmatpush.bf16.msrb.mxu1 %v3906_v29  ;;  %v1974_v2 = vpop.f32.mrf.mxu1 }
 0x15a   :  { %2565 = vmatpush.bf16.msrb.mxu2 %v3970_v10  ;;  %v394_v10 = vperm.slane %v4834_v31, 3  ;;  %v4031_v31 = vld [vmem:[#allocation7 + $0x188] sm:$0xf0] }
 0x15c   :  { %2553 = vmatmul.bf16.vlgmr.msrb.gmra.mxu1 %v4871_v49  ;;  %v1961_v59 = vpop.f32.mrf.mxu0  ;;  %v4086_v49 = vor.u32 %v4498_v15, %v4085_v14  ;;  %v4487_v14 = vld [vmem:[#allocation7 + $0x1a4] sm:$0xf]  ;;  %v4047_v15 = vld [vmem:[#allocation7 + $0x1a8] sm:$0xf0] }
 0x15d   :  { %2733 = vmatpush.bf16.msra.mxu1 %v4514_v58 }
 0x15e   :  { %2519 = vmatpush.bf16.msrb.mxu3 %v4086_v49  ;;  %v4050_v49 = vor.u32 %v4487_v14, %v4047_v15 }
 0x160   :  { %v1935_v13 = vpop.f32.mrf.mxu2 }
 0x161   :  { %v1948_v45 = vpop.f32.mrf.mxu3  ;;  %v1936_v41 = vadd.f32 %v1935_v13, %v1923_v11  ;;  %v1976_v18 = vpop.f32.mrf.mxu1  ;;  %v4055_v11 = vld [vmem:[#allocation7 + $0x1b8] sm:$0xf0] }
 0x162   :  { %2520 = vmatpush.bf16.msrb.mxu3 %v4078_v22 }
 0x163   :  { %v1949_v16 = vadd.f32 %v1948_v45, %v1936_v41 }
 0x164   :  { %v1963_v20 = vpop.f32.mrf.mxu0 }
 0x165   :  { %v1962_v17 = vadd.f32 %v1961_v59, %v1949_v16  ;;  %v4485_v16 = vld [vmem:[#allocation7 + $0x194] sm:$0xf] }
 0x166   :  { %2521 = vmatpush.bf16.msrb.mxu3 %v4070_v60 }
 0x167   :  { %v1975_v12 = vadd.f32 %v1974_v2, %v1962_v17  ;;  %v4058_v2 = vor.u32 %v4489_v51, %v4055_v11  ;;  %v4039_v17 = vld [vmem:[#allocation7 + $0x198] sm:$0xf0]  ;;  %v4507_v51 = vld [vmem:[#allocation9 + $0x40] sm:$0xff] }
 0x168   :  { %v1937_v5 = vpop.f32.mrf.mxu2  ;;  %v4042_v7 = vor.u32 %v4485_v16, %v4039_v17  ;;  %v4522_v11 = vld [vmem:[#allocation10 + $0x38] sm:$0xff] }
 0x169   :  { %v1950_v26 = vpop.f32.mrf.mxu3  ;;  %v2084_v48 = vmax.f32 %v1975_v12, 0.0  ;;  %v4034_v12 = vor.u32 %v4483_v21, %v4031_v31  ;;  %v2154_v5 = vld [vmem:[%s4899_s4] sm:$0x3]  ;;  %v4518_v21 = vld [vmem:[#allocation10 + $0x18] sm:$0xff]  ;;  %v4517_v31 = vld [vmem:[#allocation10 + $0x10] sm:$0xff] }
 0x16a   :  { %2522 = vmatpush.bf16.msrb.mxu3 %v4062_v33 }
 0x16b   :  { %v2088_v27 = vpack.c.bf16 %v2084_v48, %v2084_v48  ;;  %v2156_v48 = vperm.slane %v2154_v5, 0 }
 0x16d   :  { %2514 = vmatmul.bf16.vlgmr.msra.gmra.mxu2 %v2088_v27 }
 0x16e   :  { %2523 = vmatpush.bf16.msrb.mxu3 %v4054_v25  ;;  %2816 = vmatpush.bf16.msra.mxu2 %v4522_v11 }
 0x172   :  { %2524 = vmatpush.bf16.msrb.mxu3 %v4046_v50  ;;  %v2157_v50 = vperm.slane %v2154_v5, 1 }
 0x176   :  { %2525 = vmatpush.bf16.msrb.mxu3 %v4038_v57  ;;  %v4506_v57 = vld [vmem:[#allocation9 + $0x38] sm:$0xff] }
 0x177   :  { %2720 = vmatpush.bf16.msrb.mxu0 %v4506_v57 }
 0x179   :  { %v1987_v28 = vpop.f32.mrf.mxu1 }
 0x17a   :  { %2526 = vmatpush.bf16.msrb.mxu3 %v4030_v63  ;;  %v1988_v45 = vadd.f32 %v1987_v28, %v394_v10  ;;  %v4503_v63 = vld [vmem:[#allocation9 + $0x20] sm:$0xff]  ;;  %v4508_v10 = vld [vmem:[#allocation9 + $0x48] sm:$0xff] }
 0x17b   :  { %2721 = vmatpush.bf16.msrb.mxu0 %v4505_v61 }
 0x17c   :  { %v4879_v34 = vpop.f32.mrf.mxu0 }
 0x17d   :  { %2566 = vmatmul.bf16.vlgmr.msrb.gmra.mxu2 %v2088_v27 }
 0x17e   :  { %2571 = vmatpush.bf16.msra.mxu3 %v4090_v0  ;;  %v4502_v0 = vld [vmem:[#allocation9 + $0x18] sm:$0xff] }
 0x17f   :  { %2722 = vmatpush.bf16.msrb.mxu0 %v4504_v42 }
 0x180   :  { %v2000_v39 = vpop.f32.mrf.mxu2 }
 0x181   :  { %v2013_v40 = vpop.f32.mrf.mxu3  ;;  %v1989_v52 = vpop.f32.mrf.mxu1  ;;  %v2001_v20 = vadd.f32 %v2000_v39, %v1988_v45 }
 0x182   :  { %2572 = vmatpush.bf16.msra.mxu3 %v4082_v1 }
 0x183   :  { %v2014_v23 = vadd.f32 %v2013_v40, %v2001_v20  ;;  %2723 = vmatpush.bf16.msrb.mxu0 %v4503_v63  ;;  %v4520_v20 = vld [vmem:[#allocation10 + $0x28] sm:$0xff] }
 0x184   :  { %v2028_v53 = vpop.f32.mrf.mxu0 }
 0x185   :  { %v2027_v26 = vadd.f32 %v4879_v34, %v2014_v23  ;;  %v4515_v23 = vld [vmem:[#allocation10] sm:$0xff] }
 0x186   :  { %2573 = vmatpush.bf16.msra.mxu3 %v4074_v19  ;;  %v4500_v19 = vld [vmem:[#allocation9 + $0x8] sm:$0xff] }
 0x187   :  { %2724 = vmatpush.bf16.msrb.mxu0 %v4502_v0 }
 0x188   :  { %v2002_v29 = vpop.f32.mrf.mxu2 }
 0x189   :  { %v2015_v62 = vpop.f32.mrf.mxu3  ;;  %v4513_v29 = vld [vmem:[#allocation9 + $0x70] sm:$0xff] }
 0x18a   :  { %2574 = vmatpush.bf16.msra.mxu3 %v4066_v54  ;;  %2734 = vmatpush.bf16.msra.mxu1 %v4513_v29  ;;  %v4509_v54 = vld [vmem:[#allocation9 + $0x50] sm:$0xff] }
 0x18b   :  { %2725 = vmatpush.bf16.msrb.mxu0 %v4501_v37 }
 0x18e   :  { %2575 = vmatpush.bf16.msra.mxu3 %v4058_v2 }
 0x18f   :  { %2726 = vmatpush.bf16.msrb.mxu0 %v4500_v19 }
 0x192   :  { %2576 = vmatpush.bf16.msra.mxu3 %v4050_v49 }
 0x193   :  { %2727 = vmatpush.bf16.msrb.mxu0 %v4499_v44 }
 0x196   :  { %2577 = vmatpush.bf16.msra.mxu3 %v4042_v7  ;;  %v4519_v7 = vld [vmem:[#allocation10 + $0x20] sm:$0xff] }
 0x199   :  { %v2039_v6 = vpop.f32.mrf.mxu1 }
 0x19a   :  { %2578 = vmatpush.bf16.msra.mxu3 %v4034_v12  ;;  %v2040_v60 = vadd.f32 %v2039_v6, %v2027_v26  ;;  %v4512_v6 = vld [vmem:[#allocation9 + $0x68] sm:$0xff] }
 0x19b   :  { %2735 = vmatpush.bf16.msra.mxu1 %v4512_v6  ;;  %v4535_v26 = vld [vmem:[%s4901_s6] ss:$0 sm:$0xff] }
 0x19c   :  { %v2489_v8 = vpop.f32.mrf.mxu0 }
 0x19d   :  { %v2490_v28 = vadd.f32 %v2489_v8, %v2156_v48  ;;  %v4510_v8 = vld [vmem:[#allocation9 + $0x58] sm:$0xff] }
 0x19f   :  { %2736 = vmatpush.bf16.msra.mxu1 %v4511_v9 }
 0x1a0   :  { %v2052_v59 = vpop.f32.mrf.mxu2 }
 0x1a1   :  { %v2065_v13 = vpop.f32.mrf.mxu3  ;;  %v2041_v41 = vpop.f32.mrf.mxu1  ;;  %v2053_v27 = vadd.f32 %v2052_v59, %v2040_v60  ;;  %v4521_v59 = vld [vmem:[#allocation10 + $0x30] sm:$0xff] }
 0x1a2   :  { %2817 = vmatpush.bf16.msra.mxu2 %v4521_v59 }
 0x1a3   :  { %v2066_v33 = vadd.f32 %v2065_v13, %v2053_v27  ;;  %2737 = vmatpush.bf16.msra.mxu1 %v4510_v8 }
 0x1a4   :  { %v2491_v18 = vpop.f32.mrf.mxu0 }
 0x1a6   :  { %2818 = vmatpush.bf16.msra.mxu2 %v4520_v20 }
 0x1a7   :  { %2738 = vmatpush.bf16.msra.mxu1 %v4509_v54 }
 0x1a8   :  { %v2054_v22 = vpop.f32.mrf.mxu2 }
 0x1a9   :  { %v2067_v24 = vpop.f32.mrf.mxu3  ;;  %v4516_v22 = vld [vmem:[#allocation10 + $0x8] sm:$0xff] }
 0x1aa   :  { %2819 = vmatpush.bf16.msra.mxu2 %v4519_v7 }
 0x1ab   :  { %2739 = vmatpush.bf16.msra.mxu1 %v4508_v10 }
 0x1ae   :  { %2820 = vmatpush.bf16.msra.mxu2 %v4518_v21 }
 0x1af   :  { %2740 = vmatpush.bf16.msra.mxu1 %v4507_v51 }
 0x1b2   :  { %2821 = vmatpush.bf16.msra.mxu2 %v4517_v31 }
 0x1b6   :  { %2822 = vmatpush.bf16.msra.mxu2 %v4516_v22 }
 0x1b9   :  { %v2502_v30 = vpop.f32.mrf.mxu1 }
 0x1ba   :  { %v2503_v32 = vadd.f32 %v2502_v30, %v2490_v28  ;;  %2823 = vmatpush.bf16.msra.mxu2 %v4515_v23 }
 0x1bc   :  { %v2541_v35 = vpop.f32.mrf.mxu0 }
 0x1bd   :  { %v2078_v38 = vpop.f32.mrf.mxu3  ;;  %v2542_v52 = vadd.f32 %v2541_v35, %v2157_v50 }
 0x1be   :  { %v2079_v39 = vadd.f32 %v2078_v38, %v2066_v33 }
 0x1c0   :  { %v2085_v25 = vmax.f32 %v2079_v39, 0.0 }
 0x1c1   :  { %v2504_v43 = vpop.f32.mrf.mxu1 }
 0x1c2   :  { %v2089_v40 = vpack.c.bf16 %v2085_v25, %v2085_v25 }
 0x1c4   :  { %2527 = vmatmul.bf16.vlgmr.msrb.gmra.mxu3 %v2089_v40  ;;  %v2543_v34 = vpop.f32.mrf.mxu0 }
 0x1c5   :  { %v2080_v46 = vpop.f32.mrf.mxu3 }
 0x1d4   :  { %2579 = vmatmul.bf16.vlgmr.msra.gmra.mxu3 %v2089_v40 }
 0x1d9   :  { %v2554_v53 = vpop.f32.mrf.mxu1 }
 0x1da   :  { %v2555_v55 = vadd.f32 %v2554_v53, %v2542_v52 }
 0x1e1   :  { %v2556_v56 = vpop.f32.mrf.mxu1 }
 0x1f0   :  { %v2515_v47 = vpop.f32.mrf.mxu2 }
 0x1f1   :  { %v2516_v62 = vadd.f32 %v2515_v47, %v2503_v32  ;;  %v4536_v32 = vld [vmem:[%s4903_s8] ss:$0 sm:$0xff] }
 0x1f8   :  { %v2517_v36 = vpop.f32.mrf.mxu2 }
 0x200   :  { %v2567_v1 = vpop.f32.mrf.mxu2 }
 0x201   :  { %v2568_v3 = vadd.f32 %v2567_v1, %v2555_v55 }
 0x208   :  { %v2569_v4 = vpop.f32.mrf.mxu2 }
 0x247   :  { %v2528_v2 = vpop.f32.mrf.mxu3 }
 0x248   :  { %v2529_v45 = vadd.f32 %v2528_v2, %v2516_v62 }
 0x24a   :  { %v2584_v13 = vmax.f32 %v2529_v45, 0.0 }
 0x24c   :  { %v2586_v14 = vpack.c.bf16 %v2584_v13, %v2584_v13 }
 0x24e   :  { %2728 = vmatmul.bf16.vlgmr.msrb.gmra.mxu0 %v2586_v14 }
 0x24f   :  { %v2530_v15 = vpop.f32.mrf.mxu3 }
 0x257   :  { %v2580_v41 = vpop.f32.mrf.mxu3 }
 0x258   :  { %v2581_v49 = vadd.f32 %v2580_v41, %v2568_v3 }
 0x25a   :  { %v2585_v16 = vmax.f32 %v2581_v49, 0.0 }
 0x25c   :  { %v2587_v17 = vpack.c.bf16 %v2585_v16, %v2585_v16 }
 0x25e   :  { %2741 = vmatmul.bf16.vlgmr.msra.gmra.mxu1 %v2587_v17 }
 0x25f   :  { %v2582_v18 = vpop.f32.mrf.mxu3 }
 0x2cb   :  { %v2729_v24 = vpop.f32.mrf.mxu0 }
 0x2cc   :  { %v2730_v5 = vadd.f32 %v4535_v26, %v2729_v24 }
 0x2d3   :  { %v2731_v12 = vpop.f32.mrf.mxu0 }
 0x2db   :  { %v2742_v60 = vpop.f32.mrf.mxu1 }
 0x2dc   :  { %v2743_v48 = vadd.f32 %v2742_v60, %v2730_v5 }
 0x2de   :  { %v2746_v27 = vmax.f32 %v2743_v48, 0.0 }
 0x2e0   :  { %v2747_v28 = vpack.c.bf16 %v2746_v27, %v2746_v27 }
 0x2e2   :  { %2824 = vmatmul.bf16.vlgmr.msra.gmra.mxu2 %v2747_v28 }
 0x2e3   :  { %v2744_v30 = vpop.f32.mrf.mxu1 }
 0x365   :  { %v2825_v33 = vpop.f32.mrf.mxu2 }
 0x366   :  { %v2826_v35 = vadd.f32 %v4536_v32, %v2825_v33 }
 0x368   :  { %v2829_v38 = vpack.c.bf16 %v2826_v35, %v2826_v35 }
 0x36a   :  { %2830 = vst [vmem:[%s4904_s9] sm:$0xf] %v2829_v38 }
 0x36d   :  { %v2827_v39 = vpop.f32.mrf.mxu2 }
 0x36e   :  { %2835 = vsyncpa [#allocation3], 1 }
 0x36f   :  { %2836 = vsyncpa [#allocation5], 1 }
 0x370   :  { %2837 = vsyncpa [#allocation8], 1 }
 0x371   :  { %2838 = vsyncpa [#allocation11], 1 }

</bundles_post_ra>
